<compile_context>
chip_gen: v5e
topology: v5e:2x2
jax: 0.10.0
libtpu: 0.0.40
codegen_flags: <defaults>
</compile_context>

<pallas_src>
import jax
import jax.numpy as jnp
from jax.experimental import pallas as pl
from jax.experimental.pallas import tpu as pltpu

# Small, module-consistent stand-in hyper-parameters (real module: heads=8,
# dim=2048, dim_head=256, mlp=2048).  Chosen so every last dim is lane-dense
# and every per-head lane slice is 128-aligned.
HEADS = 2
DIM = 128
DIM_HEAD = 128
INNER = HEADS * DIM_HEAD      # 256
MLP = 128
EPS = 1e-5                    # torch nn.LayerNorm default eps


def _layernorm(x, gamma, beta):
    # One-pass: var = E[x^2] - mu^2 (biased, like torch).
    mu = jnp.mean(x, axis=-1, keepdims=True)
    ms = jnp.mean(x * x, axis=-1, keepdims=True)
    var = ms - mu * mu
    return (x - mu) * jax.lax.rsqrt(var + EPS) * gamma + beta


def transformer_kernel(q_ref, k_ref, v_ref,
                       ln_g_ref, ln_b_ref,
                       wq_ref, wk_ref, wv_ref,
                       wo_ref, bo_ref,
                       w1_ref, b1_ref, w2_ref, b2_ref,
                       out_ref,
                       qp_sc, m_sc, l_sc, acc_sc):
    kv = pl.program_id(1)
    n_kv = pl.num_programs(1)

    Bb, N, D = q_ref.shape
    _, TKV, _ = k_ref.shape
    H, Dh = HEADS, DIM_HEAD
    Sq = Bb * N
    Sk = Bb * TKV

    gamma = ln_g_ref[0]       # (D,)
    beta = ln_b_ref[0]        # (D,)

    # --- first KV step: LN(q), packed Q projection (scale folded into Wq),
    #     and online-softmax state init ---
    @pl.when(kv == 0)
    def _():
        q2 = q_ref[...].reshape(Sq, D)
        qn = _layernorm(q2, gamma, beta)
        qp = jnp.dot(qn.astype(jnp.bfloat16), wq_ref[...],
                     preferred_element_type=jnp.float32)          # (Sq, H*Dh)
        qp_sc[...] = qp.astype(jnp.bfloat16).reshape(Bb, N, H * Dh)
        m_sc[...] = jnp.full_like(m_sc, -jnp.inf)
        l_sc[...] = jnp.zeros_like(l_sc)
        acc_sc[...] = jnp.zeros_like(acc_sc)

    # --- every KV step: LN + packed K/V projections for this KV tile ---
    k2 = k_ref[...].reshape(Sk, D)
    v2 = v_ref[...].reshape(Sk, D)
    kn = _layernorm(k2, gamma, beta)
    vn = _layernorm(v2, gamma, beta)
    kp = jnp.dot(kn.astype(jnp.bfloat16), wk_ref[...],
                 preferred_element_type=jnp.float32).astype(jnp.bfloat16)
    vp = jnp.dot(vn.astype(jnp.bfloat16), wv_ref[...],
                 preferred_element_type=jnp.float32).astype(jnp.bfloat16)
    kh = kp.reshape(Bb, TKV, H * Dh)
    vh = vp.reshape(Bb, TKV, H * Dh)

    # --- online softmax, static per-head loop (lane slices, no transposes) ---
    for h in range(H):
        sl = slice(h * Dh, (h + 1) * Dh)          # 128-aligned lane slice
        hb = slice(h * Bb, (h + 1) * Bb)          # per-head rows of m/l scratch

        q_h = qp_sc[:, :, sl]                     # (Bb, N, Dh) bf16
        s = jnp.einsum('bnd,bmd->bnm', q_h, kh[:, :, sl],
                       preferred_element_type=jnp.float32)        # (Bb, N, TKV)

        m_prev = m_sc[hb]                         # (Bb, N, 1)
        m_new = jnp.maximum(m_prev, jnp.max(s, axis=-1, keepdims=True))
        alpha = jnp.exp(m_prev - m_new)
        p = jnp.exp(s - m_new)

        l_sc[hb] = alpha * l_sc[hb] + jnp.sum(p, axis=-1, keepdims=True)
        acc_sc[:, :, sl] = alpha * acc_sc[:, :, sl] + jnp.einsum(
            'bnm,bmd->bnd', p.astype(jnp.bfloat16), vh[:, :, sl],
            preferred_element_type=jnp.float32)
        m_sc[hb] = m_new

    # --- last KV step: normalize (EUP reciprocal), Wo, residual, FFN ---
    @pl.when(kv == n_kv - 1)
    def _():
        for h in range(H):
            sl = slice(h * Dh, (h + 1) * Dh)
            hb = slice(h * Bb, (h + 1) * Bb)
            inv = pl.reciprocal(l_sc[hb], approx=True)            # (Bb, N, 1)
            acc_sc[:, :, sl] = acc_sc[:, :, sl] * inv

        ctx = acc_sc[...].reshape(Sq, H * Dh).astype(jnp.bfloat16)
        q2 = q_ref[...].reshape(Sq, D)

        # single (Sq, H*Dh) @ (H*Dh, D) output projection + residual with raw q
        x = jnp.dot(ctx, wo_ref[...],
                    preferred_element_type=jnp.float32) + bo_ref[0] + q2

        # FeedForward (Linear -> exact GELU -> Linear) + residual
        h1 = jnp.dot(x.astype(jnp.bfloat16), w1_ref[...],
                     preferred_element_type=jnp.float32) + b1_ref[0]
        h1 = 0.5 * h1 * (1.0 + jax.lax.erf(h1 * (2.0 ** -0.5)))   # nn.GELU() exact
        x2 = jnp.dot(h1.astype(jnp.bfloat16), w2_ref[...],
                     preferred_element_type=jnp.float32) + b2_ref[0]

        out_ref[...] = (x2 + x).astype(out_ref.dtype).reshape(Bb, N, D)


def transformer_v1(q, k, v, params, *, batch_block=None, kv_block=None):
    b, n, dim = q.shape
    bk, m, _ = k.shape
    assert bk == b and dim == DIM and v.shape == k.shape

    # Default: split the batch into 2 "parallel" grid blocks (feeds both
    # TensorCores on v7x; negligible per-step cost elsewhere).
    if batch_block is None:
        batch_block = b // 2 if (b % 2 == 0 and b >= 2) else b
    assert b % batch_block == 0

    # KV tile for the flash loop (trailing "arbitrary" reduction axis).
    if kv_block is None:
        kv_block = m if m <= 512 else 512
    assert m % kv_block == 0 and kv_block % 8 == 0

    grid = (b // batch_block, m // kv_block)

    (g, bta, wq, wk, wv, wo, bo, w1, b1, w2, b2) = params

    # One-time host-side weight prep: fold the attention scale into Wq in f32,
    # then cast all MXU weight operands to bf16 (biases / LN params stay f32).
    scale = DIM_HEAD ** (-0.5)
    wq_b = (wq * scale).astype(jnp.bfloat16)
    wk_b = wk.astype(jnp.bfloat16)
    wv_b = wv.astype(jnp.bfloat16)
    wo_b = wo.astype(jnp.bfloat16)
    w1_b = w1.astype(jnp.bfloat16)
    w2_b = w2.astype(jnp.bfloat16)

    prepped = [g, bta, wq_b, wk_b, wv_b, wo_b, bo, w1_b, b1, w2_b, b2]

    def const_spec(shape):
        nd = len(shape)
        return pl.BlockSpec(shape, lambda i, kv, _n=nd: (0,) * _n)

    in_specs = [
        pl.BlockSpec((batch_block, n, DIM), lambda i, kv: (i, 0, 0)),        # q
        pl.BlockSpec((batch_block, kv_block, DIM), lambda i, kv: (i, kv, 0)),  # k
        pl.BlockSpec((batch_block, kv_block, DIM), lambda i, kv: (i, kv, 0)),  # v
    ] + [const_spec(p.shape) for p in prepped]

    return pl.pallas_call(
        transformer_kernel,
        out_shape=jax.ShapeDtypeStruct((b, n, dim), q.dtype),
        grid=grid,
        in_specs=in_specs,
        out_specs=pl.BlockSpec((batch_block, n, DIM), lambda i, kv: (i, 0, 0)),
        scratch_shapes=[
            pltpu.VMEM((batch_block, n, INNER), jnp.bfloat16),        # projected q
            pltpu.VMEM((HEADS * batch_block, n, 1), jnp.float32),     # running max
            pltpu.VMEM((HEADS * batch_block, n, 1), jnp.float32),     # running sum
            pltpu.VMEM((batch_block, n, INNER), jnp.float32),         # ctx accumulator
        ],
        compiler_params=pltpu.CompilerParams(
            dimension_semantics=("parallel", "arbitrary"),
            vmem_limit_bytes=32 * 1024 * 1024),
    )(q, k, v, *prepped)


def transformer_v1_ref(q, k, v, params):
    """Plain-JAX f32 reference (module math) for a correctness check."""
    (g, bta, wq, wk, wv, wo, bo, w1, b1, w2, b2) = params
    g, bta, bo, b1, b2 = g[0], bta[0], bo[0], b1[0], b2[0]

    def ln(x):
        mu = jnp.mean(x, -1, keepdims=True)
        var = jnp.mean(jnp.square(x - mu), -1, keepdims=True)
        return (x - mu) / jnp.sqrt(var + EPS) * g + bta

    qn, kn, vn = ln(q), ln(k), ln(v)
    qp, kp, vp = qn @ wq, kn @ wk, vn @ wv
    B, N, _ = q.shape
    M = k.shape[1]
    qh = qp.reshape(B, N, HEADS, DIM_HEAD).transpose(0, 2, 1, 3)
    kh = kp.reshape(B, M, HEADS, DIM_HEAD).transpose(0, 2, 1, 3)
    vh = vp.reshape(B, M, HEADS, DIM_HEAD).transpose(0, 2, 1, 3)
    dots = jnp.einsum('bhid,bhjd->bhij', qh, kh) * (DIM_HEAD ** -0.5)
    attn = jax.nn.softmax(dots, axis=-1)
    out = jnp.einsum('bhij,bhjd->bhid', attn, vh)
    out = out.transpose(0, 2, 1, 3).reshape(B, N, INNER)
    x = out @ wo + bo + q
    h1 = x @ w1 + b1
    h1 = 0.5 * h1 * (1.0 + jax.lax.erf(h1 / jnp.sqrt(2.0)))
    return h1 @ w2 + b2 + x


if __name__ == "__main__":
    key = jax.random.PRNGKey(0)
    B, N, M = 2, 8, 16               # M=16 with kv_block=8 -> 2 online-softmax steps
    ks = jax.random.split(key, 16)

    q = jax.random.normal(ks[0], (B, N, DIM), jnp.float32)
    k = jax.random.normal(ks[1], (B, M, DIM), jnp.float32)
    v = jax.random.normal(ks[2], (B, M, DIM), jnp.float32)

    s = 0.05  # deterministic synthetic parameter init
    params = [
        1.0 + s * jax.random.normal(ks[3], (1, DIM), jnp.float32),    # LN gamma
        s * jax.random.normal(ks[4], (1, DIM), jnp.float32),          # LN beta
        s * jax.random.normal(ks[5], (DIM, INNER), jnp.float32),      # Wq   [in,out]
        s * jax.random.normal(ks[6], (DIM, INNER), jnp.float32),      # Wk
        s * jax.random.normal(ks[7], (DIM, INNER), jnp.float32),      # Wv
        s * jax.random.normal(ks[8], (INNER, DIM), jnp.float32),      # Wo
        s * jax.random.normal(ks[9], (1, DIM), jnp.float32),          # bo
        s * jax.random.normal(ks[10], (DIM, MLP), jnp.float32),       # W1
        s * jax.random.normal(ks[11], (1, MLP), jnp.float32),         # b1
        s * jax.random.normal(ks[12], (MLP, DIM), jnp.float32),       # W2
        s * jax.random.normal(ks[13], (1, DIM), jnp.float32),         # b2
    ]

    out = transformer_v1(q, k, v, params, kv_block=8)
    out = jax.block_until_ready(out)

    ref = transformer_v1_ref(q, k, v, params)
    assert out.shape == (B, N, DIM)
    # tolerance covers bf16 MXU operands + approx reciprocal vs. f32 reference
    assert jnp.allclose(out, ref, atol=5e-2, rtol=5e-2), (
        f"mismatch vs reference (max abs err {jnp.max(jnp.abs(out - ref))})")

    print("KERNEL_OK")
</pallas_src>

<mosaic_0001>
module attributes {stable_mosaic.version = 11 : i64} {
  func.func @transformer_kernel(%arg0: i32, %arg1: i32, %arg2: memref<1x8x128xf32, #tpu.memory_space<vmem>>, %arg3: memref<1x8x128xf32, #tpu.memory_space<vmem>>, %arg4: memref<1x8x128xf32, #tpu.memory_space<vmem>>, %arg5: memref<1x128xf32, #tpu.memory_space<vmem>>, %arg6: memref<1x128xf32, #tpu.memory_space<vmem>>, %arg7: memref<128x256xbf16, #tpu.memory_space<vmem>>, %arg8: memref<128x256xbf16, #tpu.memory_space<vmem>>, %arg9: memref<128x256xbf16, #tpu.memory_space<vmem>>, %arg10: memref<256x128xbf16, #tpu.memory_space<vmem>>, %arg11: memref<1x128xf32, #tpu.memory_space<vmem>>, %arg12: memref<128x128xbf16, #tpu.memory_space<vmem>>, %arg13: memref<1x128xf32, #tpu.memory_space<vmem>>, %arg14: memref<128x128xbf16, #tpu.memory_space<vmem>>, %arg15: memref<1x128xf32, #tpu.memory_space<vmem>>, %arg16: memref<1x8x128xf32, #tpu.memory_space<vmem>>, %arg17: memref<1x8x256xbf16, #tpu.memory_space<vmem>>, %arg18: memref<2x8x1xf32, #tpu.memory_space<vmem>>, %arg19: memref<2x8x1xf32, #tpu.memory_space<vmem>>, %arg20: memref<1x8x256xf32, #tpu.memory_space<vmem>>) attributes {dimension_semantics = [#tpu.dimension_semantics<parallel>, #tpu.dimension_semantics<arbitrary>], iteration_bounds = array<i64: 2, 2>, scalar_prefetch = 0 : i64, scratch_operands = 4 : i64, tpu.core_type = #tpu.core_type<tc>, window_params = [{transform_indices = @transform_0, window_bounds = array<i64: 1, 8, 128>}, {transform_indices = @transform_1, window_bounds = array<i64: 1, 8, 128>}, {transform_indices = @transform_2, window_bounds = array<i64: 1, 8, 128>}, {pipeline_mode = #tpu.pipeline_mode<synchronous>, transform_indices = @transform_3, window_bounds = array<i64: 1, 128>}, {pipeline_mode = #tpu.pipeline_mode<synchronous>, transform_indices = @transform_4, window_bounds = array<i64: 1, 128>}, {pipeline_mode = #tpu.pipeline_mode<synchronous>, transform_indices = @transform_5, window_bounds = array<i64: 128, 256>}, {pipeline_mode = #tpu.pipeline_mode<synchronous>, transform_indices = @transform_6, window_bounds = array<i64: 128, 256>}, {pipeline_mode = #tpu.pipeline_mode<synchronous>, transform_indices = @transform_7, window_bounds = array<i64: 128, 256>}, {pipeline_mode = #tpu.pipeline_mode<synchronous>, transform_indices = @transform_8, window_bounds = array<i64: 256, 128>}, {pipeline_mode = #tpu.pipeline_mode<synchronous>, transform_indices = @transform_9, window_bounds = array<i64: 1, 128>}, {pipeline_mode = #tpu.pipeline_mode<synchronous>, transform_indices = @transform_10, window_bounds = array<i64: 128, 128>}, {pipeline_mode = #tpu.pipeline_mode<synchronous>, transform_indices = @transform_11, window_bounds = array<i64: 1, 128>}, {pipeline_mode = #tpu.pipeline_mode<synchronous>, transform_indices = @transform_12, window_bounds = array<i64: 128, 128>}, {pipeline_mode = #tpu.pipeline_mode<synchronous>, transform_indices = @transform_13, window_bounds = array<i64: 1, 128>}, {transform_indices = @transform_14, window_bounds = array<i64: 1, 8, 128>}]} {
    %c0 = arith.constant 0 : index
    %c0_0 = arith.constant 0 : index
    %0 = vector.load %arg5[%c0, %c0_0] : memref<1x128xf32, #tpu.memory_space<vmem>>, vector<1x128xf32>
    %1 = vector.shape_cast %0 : vector<1x128xf32> to vector<128xf32>
    %c0_1 = arith.constant 0 : index
    %c0_2 = arith.constant 0 : index
    %2 = vector.load %arg6[%c0_1, %c0_2] : memref<1x128xf32, #tpu.memory_space<vmem>>, vector<1x128xf32>
    %3 = vector.shape_cast %2 : vector<1x128xf32> to vector<128xf32>
    %c0_i32 = arith.constant 0 : i32
    %4 = arith.cmpi eq, %arg1, %c0_i32 : i32
    %5 = arith.extui %4 : i1 to i32
    %c0_i32_3 = arith.constant 0 : i32
    %6 = arith.cmpi ne, %5, %c0_i32_3 : i32
    scf.if %6 {
      %c0_74 = arith.constant 0 : index
      %c0_75 = arith.constant 0 : index
      %c0_76 = arith.constant 0 : index
      %126 = vector.load %arg2[%c0_74, %c0_75, %c0_76] : memref<1x8x128xf32, #tpu.memory_space<vmem>>, vector<1x8x128xf32>
      %127 = vector.shape_cast %126 : vector<1x8x128xf32> to vector<8x128xf32>
      %cst_77 = arith.constant dense<0.000000e+00> : vector<8xf32>
      %128 = vector.multi_reduction <add>, %127, %cst_77 [1] : vector<8x128xf32> to vector<8xf32>
      %129 = vector.shape_cast %128 : vector<8xf32> to vector<8x1xf32>
      %cst_78 = arith.constant 1.280000e+02 : f32
      %130 = vector.broadcast %cst_78 : f32 to vector<8x1xf32>
      %131 = arith.divf %129, %130 : vector<8x1xf32>
      %132 = arith.mulf %127, %127 : vector<8x128xf32>
      %cst_79 = arith.constant dense<0.000000e+00> : vector<8xf32>
      %133 = vector.multi_reduction <add>, %132, %cst_79 [1] : vector<8x128xf32> to vector<8xf32>
      %134 = vector.shape_cast %133 : vector<8xf32> to vector<8x1xf32>
      %cst_80 = arith.constant 1.280000e+02 : f32
      %135 = vector.broadcast %cst_80 : f32 to vector<8x1xf32>
      %136 = arith.divf %134, %135 : vector<8x1xf32>
      %137 = arith.mulf %131, %131 : vector<8x1xf32>
      %138 = arith.subf %136, %137 : vector<8x1xf32>
      %139 = vector.broadcast %131 : vector<8x1xf32> to vector<8x128xf32>
      %140 = arith.subf %127, %139 : vector<8x128xf32>
      %cst_81 = arith.constant 9.99999974E-6 : f32
      %141 = vector.broadcast %cst_81 : f32 to vector<8x1xf32>
      %142 = arith.addf %138, %141 : vector<8x1xf32>
      %143 = math.rsqrt %142 : vector<8x1xf32>
      %144 = vector.broadcast %143 : vector<8x1xf32> to vector<8x128xf32>
      %145 = arith.mulf %140, %144 : vector<8x128xf32>
      %146 = vector.shape_cast %1 : vector<128xf32> to vector<1x128xf32>
      %147 = vector.broadcast %146 : vector<1x128xf32> to vector<8x128xf32>
      %148 = arith.mulf %145, %147 : vector<8x128xf32>
      %149 = vector.shape_cast %3 : vector<128xf32> to vector<1x128xf32>
      %150 = vector.broadcast %149 : vector<1x128xf32> to vector<8x128xf32>
      %151 = arith.addf %148, %150 : vector<8x128xf32>
      %152 = arith.truncf %151 : vector<8x128xf32> to vector<8x128xbf16>
      %c0_82 = arith.constant 0 : index
      %c0_83 = arith.constant 0 : index
      %153 = vector.load %arg7[%c0_82, %c0_83] : memref<128x256xbf16, #tpu.memory_space<vmem>>, vector<128x256xbf16>
      %cst_84 = arith.constant dense<0.000000e+00> : vector<8x256xf32>
      %154 = tpu.matmul %152, %153, %cst_84 {dimension_numbers = #tpu.dot_dimension_numbers<[1], [0], [0], [1], [0, 0, 1, 1], [], []>} : vector<8x128xbf16>, vector<128x256xbf16>, vector<8x256xf32> -> vector<8x256xf32>
      %155 = arith.truncf %154 : vector<8x256xf32> to vector<8x256xbf16>
      %156 = vector.shape_cast %155 : vector<8x256xbf16> to vector<1x8x256xbf16>
      %c0_85 = arith.constant 0 : index
      %c0_86 = arith.constant 0 : index
      %c0_87 = arith.constant 0 : index
      %157 = vector.load %arg17[%c0_85, %c0_86, %c0_87] : memref<1x8x256xbf16, #tpu.memory_space<vmem>>, vector<1x8x256xbf16>
      tpu.vector_store %arg17[%c0_85, %c0_86, %c0_87], %156 {strides = array<i32>} : memref<1x8x256xbf16, #tpu.memory_space<vmem>>, vector<1x8x256xbf16>,
      %cst_88 = arith.constant 0xFF800000 : f32
      %158 = vector.broadcast %cst_88 : f32 to vector<2x8x1xf32>
      %c0_89 = arith.constant 0 : index
      %c0_90 = arith.constant 0 : index
      %c0_91 = arith.constant 0 : index
      %159 = vector.load %arg18[%c0_89, %c0_90, %c0_91] : memref<2x8x1xf32, #tpu.memory_space<vmem>>, vector<2x8x1xf32>
      tpu.vector_store %arg18[%c0_89, %c0_90, %c0_91], %158 {strides = array<i32>} : memref<2x8x1xf32, #tpu.memory_space<vmem>>, vector<2x8x1xf32>,
      %cst_92 = arith.constant 0.000000e+00 : f32
      %160 = vector.broadcast %cst_92 : f32 to vector<2x8x1xf32>
      %c0_93 = arith.constant 0 : index
      %c0_94 = arith.constant 0 : index
      %c0_95 = arith.constant 0 : index
      %161 = vector.load %arg19[%c0_93, %c0_94, %c0_95] : memref<2x8x1xf32, #tpu.memory_space<vmem>>, vector<2x8x1xf32>
      tpu.vector_store %arg19[%c0_93, %c0_94, %c0_95], %160 {strides = array<i32>} : memref<2x8x1xf32, #tpu.memory_space<vmem>>, vector<2x8x1xf32>,
      %cst_96 = arith.constant 0.000000e+00 : f32
      %162 = vector.broadcast %cst_96 : f32 to vector<1x8x256xf32>
      %c0_97 = arith.constant 0 : index
      %c0_98 = arith.constant 0 : index
      %c0_99 = arith.constant 0 : index
      %163 = vector.load %arg20[%c0_97, %c0_98, %c0_99] : memref<1x8x256xf32, #tpu.memory_space<vmem>>, vector<1x8x256xf32>
      tpu.vector_store %arg20[%c0_97, %c0_98, %c0_99], %162 {strides = array<i32>} : memref<1x8x256xf32, #tpu.memory_space<vmem>>, vector<1x8x256xf32>,
    } else {
    }
    %c0_4 = arith.constant 0 : index
    %c0_5 = arith.constant 0 : index
    %c0_6 = arith.constant 0 : index
    %7 = vector.load %arg3[%c0_4, %c0_5, %c0_6] : memref<1x8x128xf32, #tpu.memory_space<vmem>>, vector<1x8x128xf32>
    %8 = vector.shape_cast %7 : vector<1x8x128xf32> to vector<8x128xf32>
    %c0_7 = arith.constant 0 : index
    %c0_8 = arith.constant 0 : index
    %c0_9 = arith.constant 0 : index
    %9 = vector.load %arg4[%c0_7, %c0_8, %c0_9] : memref<1x8x128xf32, #tpu.memory_space<vmem>>, vector<1x8x128xf32>
    %10 = vector.shape_cast %9 : vector<1x8x128xf32> to vector<8x128xf32>
    %cst = arith.constant dense<0.000000e+00> : vector<8xf32>
    %11 = vector.multi_reduction <add>, %8, %cst [1] : vector<8x128xf32> to vector<8xf32>
    %12 = vector.shape_cast %11 : vector<8xf32> to vector<8x1xf32>
    %cst_10 = arith.constant 1.280000e+02 : f32
    %13 = vector.broadcast %cst_10 : f32 to vector<8x1xf32>
    %14 = arith.divf %12, %13 : vector<8x1xf32>
    %15 = arith.mulf %8, %8 : vector<8x128xf32>
    %cst_11 = arith.constant dense<0.000000e+00> : vector<8xf32>
    %16 = vector.multi_reduction <add>, %15, %cst_11 [1] : vector<8x128xf32> to vector<8xf32>
    %17 = vector.shape_cast %16 : vector<8xf32> to vector<8x1xf32>
    %cst_12 = arith.constant 1.280000e+02 : f32
    %18 = vector.broadcast %cst_12 : f32 to vector<8x1xf32>
    %19 = arith.divf %17, %18 : vector<8x1xf32>
    %20 = arith.mulf %14, %14 : vector<8x1xf32>
    %21 = arith.subf %19, %20 : vector<8x1xf32>
    %22 = vector.broadcast %14 : vector<8x1xf32> to vector<8x128xf32>
    %23 = arith.subf %8, %22 : vector<8x128xf32>
    %cst_13 = arith.constant 9.99999974E-6 : f32
    %24 = vector.broadcast %cst_13 : f32 to vector<8x1xf32>
    %25 = arith.addf %21, %24 : vector<8x1xf32>
    %26 = math.rsqrt %25 : vector<8x1xf32>
    %27 = vector.broadcast %26 : vector<8x1xf32> to vector<8x128xf32>
    %28 = arith.mulf %23, %27 : vector<8x128xf32>
    %29 = vector.shape_cast %1 : vector<128xf32> to vector<1x128xf32>
    %30 = vector.broadcast %29 : vector<1x128xf32> to vector<8x128xf32>
    %31 = arith.mulf %28, %30 : vector<8x128xf32>
    %32 = vector.shape_cast %3 : vector<128xf32> to vector<1x128xf32>
    %33 = vector.broadcast %32 : vector<1x128xf32> to vector<8x128xf32>
    %34 = arith.addf %31, %33 : vector<8x128xf32>
    %cst_14 = arith.constant dense<0.000000e+00> : vector<8xf32>
    %35 = vector.multi_reduction <add>, %10, %cst_14 [1] : vector<8x128xf32> to vector<8xf32>
    %36 = vector.shape_cast %35 : vector<8xf32> to vector<8x1xf32>
    %cst_15 = arith.constant 1.280000e+02 : f32
    %37 = vector.broadcast %cst_15 : f32 to vector<8x1xf32>
    %38 = arith.divf %36, %37 : vector<8x1xf32>
    %39 = arith.mulf %10, %10 : vector<8x128xf32>
    %cst_16 = arith.constant dense<0.000000e+00> : vector<8xf32>
    %40 = vector.multi_reduction <add>, %39, %cst_16 [1] : vector<8x128xf32> to vector<8xf32>
    %41 = vector.shape_cast %40 : vector<8xf32> to vector<8x1xf32>
    %cst_17 = arith.constant 1.280000e+02 : f32
    %42 = vector.broadcast %cst_17 : f32 to vector<8x1xf32>
    %43 = arith.divf %41, %42 : vector<8x1xf32>
    %44 = arith.mulf %38, %38 : vector<8x1xf32>
    %45 = arith.subf %43, %44 : vector<8x1xf32>
    %46 = vector.broadcast %38 : vector<8x1xf32> to vector<8x128xf32>
    %47 = arith.subf %10, %46 : vector<8x128xf32>
    %cst_18 = arith.constant 9.99999974E-6 : f32
    %48 = vector.broadcast %cst_18 : f32 to vector<8x1xf32>
    %49 = arith.addf %45, %48 : vector<8x1xf32>
    %50 = math.rsqrt %49 : vector<8x1xf32>
    %51 = vector.broadcast %50 : vector<8x1xf32> to vector<8x128xf32>
    %52 = arith.mulf %47, %51 : vector<8x128xf32>
    %53 = vector.shape_cast %1 : vector<128xf32> to vector<1x128xf32>
    %54 = vector.broadcast %53 : vector<1x128xf32> to vector<8x128xf32>
    %55 = arith.mulf %52, %54 : vector<8x128xf32>
    %56 = vector.shape_cast %3 : vector<128xf32> to vector<1x128xf32>
    %57 = vector.broadcast %56 : vector<1x128xf32> to vector<8x128xf32>
    %58 = arith.addf %55, %57 : vector<8x128xf32>
    %59 = arith.truncf %34 : vector<8x128xf32> to vector<8x128xbf16>
    %c0_19 = arith.constant 0 : index
    %c0_20 = arith.constant 0 : index
    %60 = vector.load %arg8[%c0_19, %c0_20] : memref<128x256xbf16, #tpu.memory_space<vmem>>, vector<128x256xbf16>
    %cst_21 = arith.constant dense<0.000000e+00> : vector<8x256xf32>
    %61 = tpu.matmul %59, %60, %cst_21 {dimension_numbers = #tpu.dot_dimension_numbers<[1], [0], [0], [1], [0, 0, 1, 1], [], []>} : vector<8x128xbf16>, vector<128x256xbf16>, vector<8x256xf32> -> vector<8x256xf32>
    %62 = arith.truncf %61 : vector<8x256xf32> to vector<8x256xbf16>
    %63 = arith.truncf %58 : vector<8x128xf32> to vector<8x128xbf16>
    %c0_22 = arith.constant 0 : index
    %c0_23 = arith.constant 0 : index
    %64 = vector.load %arg9[%c0_22, %c0_23] : memref<128x256xbf16, #tpu.memory_space<vmem>>, vector<128x256xbf16>
    %cst_24 = arith.constant dense<0.000000e+00> : vector<8x256xf32>
    %65 = tpu.matmul %63, %64, %cst_24 {dimension_numbers = #tpu.dot_dimension_numbers<[1], [0], [0], [1], [0, 0, 1, 1], [], []>} : vector<8x128xbf16>, vector<128x256xbf16>, vector<8x256xf32> -> vector<8x256xf32>
    %66 = arith.truncf %65 : vector<8x256xf32> to vector<8x256xbf16>
    %67 = vector.shape_cast %62 : vector<8x256xbf16> to vector<1x8x256xbf16>
    %68 = vector.shape_cast %66 : vector<8x256xbf16> to vector<1x8x256xbf16>
    %c0_25 = arith.constant 0 : index
    %c0_26 = arith.constant 0 : index
    %c0_27 = arith.constant 0 : index
    %69 = vector.load %arg17[%c0_25, %c0_26, %c0_27] : memref<1x8x256xbf16, #tpu.memory_space<vmem>>, vector<1x8x128xbf16>
    %70 = vector.extract_strided_slice %67 {offsets = [0, 0, 0], sizes = [1, 8, 128], strides = [1, 1, 1]} : vector<1x8x256xbf16> to vector<1x8x128xbf16>
    "tpu.trace_start"() <{level = 10 : i32, message = "bnd,bmd->bnm"}> : () -> ()
    %cst_28 = arith.constant dense<0.000000e+00> : vector<1x8x8xf32>
    %71 = tpu.matmul %69, %70, %cst_28 {dimension_numbers = #tpu.dot_dimension_numbers<[2], [2], [1], [1], [0, 0, 0, 1, 1, 1], [0], [0]>} : vector<1x8x128xbf16>, vector<1x8x128xbf16>, vector<1x8x8xf32> -> vector<1x8x8xf32>
    "tpu.trace_stop"() : () -> ()
    %c0_29 = arith.constant 0 : index
    %c0_30 = arith.constant 0 : index
    %c0_31 = arith.constant 0 : index
    %72 = vector.load %arg18[%c0_29, %c0_30, %c0_31] : memref<2x8x1xf32, #tpu.memory_space<vmem>>, vector<1x8x1xf32>
    %cst_32 = arith.constant dense<0xFF800000> : vector<1x8xf32>
    %73 = vector.multi_reduction <maximumf>, %71, %cst_32 [2] : vector<1x8x8xf32> to vector<1x8xf32>
    %74 = vector.shape_cast %73 : vector<1x8xf32> to vector<1x8x1xf32>
    %75 = arith.maximumf %72, %74 : vector<1x8x1xf32>
    %76 = arith.subf %72, %75 : vector<1x8x1xf32>
    %77 = math.exp %76 : vector<1x8x1xf32>
    %78 = vector.broadcast %75 : vector<1x8x1xf32> to vector<1x8x8xf32>
    %79 = arith.subf %71, %78 : vector<1x8x8xf32>
    %80 = math.exp %79 : vector<1x8x8xf32>
    %c0_33 = arith.constant 0 : index
    %c0_34 = arith.constant 0 : index
    %c0_35 = arith.constant 0 : index
    %81 = vector.load %arg19[%c0_33, %c0_34, %c0_35] : memref<2x8x1xf32, #tpu.memory_space<vmem>>, vector<1x8x1xf32>
    %82 = arith.mulf %77, %81 : vector<1x8x1xf32>
    %cst_36 = arith.constant dense<0.000000e+00> : vector<1x8xf32>
    %83 = vector.multi_reduction <add>, %80, %cst_36 [2] : vector<1x8x8xf32> to vector<1x8xf32>
    %84 = vector.shape_cast %83 : vector<1x8xf32> to vector<1x8x1xf32>
    %85 = arith.addf %82, %84 : vector<1x8x1xf32>
    %c0_37 = arith.constant 0 : index
    %c0_38 = arith.constant 0 : index
    %c0_39 = arith.constant 0 : index
    %86 = vector.load %arg19[%c0_37, %c0_38, %c0_39] : memref<2x8x1xf32, #tpu.memory_space<vmem>>, vector<1x8x1xf32>
    tpu.vector_store %arg19[%c0_37, %c0_38, %c0_39], %85 {strides = array<i32>} : memref<2x8x1xf32, #tpu.memory_space<vmem>>, vector<1x8x1xf32>,
    %c0_40 = arith.constant 0 : index
    %c0_41 = arith.constant 0 : index
    %c0_42 = arith.constant 0 : index
    %87 = vector.load %arg20[%c0_40, %c0_41, %c0_42] : memref<1x8x256xf32, #tpu.memory_space<vmem>>, vector<1x8x128xf32>
    %88 = vector.broadcast %77 : vector<1x8x1xf32> to vector<1x8x128xf32>
    %89 = arith.mulf %88, %87 : vector<1x8x128xf32>
    %90 = arith.truncf %80 : vector<1x8x8xf32> to vector<1x8x8xbf16>
    %91 = vector.extract_strided_slice %68 {offsets = [0, 0, 0], sizes = [1, 8, 128], strides = [1, 1, 1]} : vector<1x8x256xbf16> to vector<1x8x128xbf16>
    "tpu.trace_start"() <{level = 10 : i32, message = "bnm,bmd->bnd"}> : () -> ()
    %cst_43 = arith.constant dense<0.000000e+00> : vector<1x8x128xf32>
    %92 = tpu.matmul %90, %91, %cst_43 {dimension_numbers = #tpu.dot_dimension_numbers<[2], [1], [1], [2], [0, 0, 0, 1, 1, 2], [0], [0]>} : vector<1x8x8xbf16>, vector<1x8x128xbf16>, vector<1x8x128xf32> -> vector<1x8x128xf32>
    "tpu.trace_stop"() : () -> ()
    %93 = arith.addf %89, %92 : vector<1x8x128xf32>
    %c0_44 = arith.constant 0 : index
    %c0_45 = arith.constant 0 : index
    %c0_46 = arith.constant 0 : index
    %94 = vector.load %arg20[%c0_44, %c0_45, %c0_46] : memref<1x8x256xf32, #tpu.memory_space<vmem>>, vector<1x8x128xf32>
    tpu.vector_store %arg20[%c0_44, %c0_45, %c0_46], %93 {strides = array<i32>} : memref<1x8x256xf32, #tpu.memory_space<vmem>>, vector<1x8x128xf32>,
    %c0_47 = arith.constant 0 : index
    %c0_48 = arith.constant 0 : index
    %c0_49 = arith.constant 0 : index
    %95 = vector.load %arg18[%c0_47, %c0_48, %c0_49] : memref<2x8x1xf32, #tpu.memory_space<vmem>>, vector<1x8x1xf32>
    tpu.vector_store %arg18[%c0_47, %c0_48, %c0_49], %75 {strides = array<i32>} : memref<2x8x1xf32, #tpu.memory_space<vmem>>, vector<1x8x1xf32>,
    %c0_50 = arith.constant 0 : index
    %c0_51 = arith.constant 0 : index
    %c128 = arith.constant 128 : index
    %96 = vector.load %arg17[%c0_50, %c0_51, %c128] : memref<1x8x256xbf16, #tpu.memory_space<vmem>>, vector<1x8x128xbf16>
    %97 = vector.extract_strided_slice %67 {offsets = [0, 0, 128], sizes = [1, 8, 128], strides = [1, 1, 1]} : vector<1x8x256xbf16> to vector<1x8x128xbf16>
    "tpu.trace_start"() <{level = 10 : i32, message = "bnd,bmd->bnm"}> : () -> ()
    %cst_52 = arith.constant dense<0.000000e+00> : vector<1x8x8xf32>
    %98 = tpu.matmul %96, %97, %cst_52 {dimension_numbers = #tpu.dot_dimension_numbers<[2], [2], [1], [1], [0, 0, 0, 1, 1, 1], [0], [0]>} : vector<1x8x128xbf16>, vector<1x8x128xbf16>, vector<1x8x8xf32> -> vector<1x8x8xf32>
    "tpu.trace_stop"() : () -> ()
    %c1 = arith.constant 1 : index
    %c0_53 = arith.constant 0 : index
    %c0_54 = arith.constant 0 : index
    %99 = vector.load %arg18[%c1, %c0_53, %c0_54] : memref<2x8x1xf32, #tpu.memory_space<vmem>>, vector<1x8x1xf32>
    %cst_55 = arith.constant dense<0xFF800000> : vector<1x8xf32>
    %100 = vector.multi_reduction <maximumf>, %98, %cst_55 [2] : vector<1x8x8xf32> to vector<1x8xf32>
    %101 = vector.shape_cast %100 : vector<1x8xf32> to vector<1x8x1xf32>
    %102 = arith.maximumf %99, %101 : vector<1x8x1xf32>
    %103 = arith.subf %99, %102 : vector<1x8x1xf32>
    %104 = math.exp %103 : vector<1x8x1xf32>
    %105 = vector.broadcast %102 : vector<1x8x1xf32> to vector<1x8x8xf32>
    %106 = arith.subf %98, %105 : vector<1x8x8xf32>
    %107 = math.exp %106 : vector<1x8x8xf32>
    %c1_56 = arith.constant 1 : index
    %c0_57 = arith.constant 0 : index
    %c0_58 = arith.constant 0 : index
    %108 = vector.load %arg19[%c1_56, %c0_57, %c0_58] : memref<2x8x1xf32, #tpu.memory_space<vmem>>, vector<1x8x1xf32>
    %109 = arith.mulf %104, %108 : vector<1x8x1xf32>
    %cst_59 = arith.constant dense<0.000000e+00> : vector<1x8xf32>
    %110 = vector.multi_reduction <add>, %107, %cst_59 [2] : vector<1x8x8xf32> to vector<1x8xf32>
    %111 = vector.shape_cast %110 : vector<1x8xf32> to vector<1x8x1xf32>
    %112 = arith.addf %109, %111 : vector<1x8x1xf32>
    %c1_60 = arith.constant 1 : index
    %c0_61 = arith.constant 0 : index
    %c0_62 = arith.constant 0 : index
    %113 = vector.load %arg19[%c1_60, %c0_61, %c0_62] : memref<2x8x1xf32, #tpu.memory_space<vmem>>, vector<1x8x1xf32>
    tpu.vector_store %arg19[%c1_60, %c0_61, %c0_62], %112 {strides = array<i32>} : memref<2x8x1xf32, #tpu.memory_space<vmem>>, vector<1x8x1xf32>,
    %c0_63 = arith.constant 0 : index
    %c0_64 = arith.constant 0 : index
    %c128_65 = arith.constant 128 : index
    %114 = vector.load %arg20[%c0_63, %c0_64, %c128_65] : memref<1x8x256xf32, #tpu.memory_space<vmem>>, vector<1x8x128xf32>
    %115 = vector.broadcast %104 : vector<1x8x1xf32> to vector<1x8x128xf32>
    %116 = arith.mulf %115, %114 : vector<1x8x128xf32>
    %117 = arith.truncf %107 : vector<1x8x8xf32> to vector<1x8x8xbf16>
    %118 = vector.extract_strided_slice %68 {offsets = [0, 0, 128], sizes = [1, 8, 128], strides = [1, 1, 1]} : vector<1x8x256xbf16> to vector<1x8x128xbf16>
    "tpu.trace_start"() <{level = 10 : i32, message = "bnm,bmd->bnd"}> : () -> ()
    %cst_66 = arith.constant dense<0.000000e+00> : vector<1x8x128xf32>
    %119 = tpu.matmul %117, %118, %cst_66 {dimension_numbers = #tpu.dot_dimension_numbers<[2], [1], [1], [2], [0, 0, 0, 1, 1, 2], [0], [0]>} : vector<1x8x8xbf16>, vector<1x8x128xbf16>, vector<1x8x128xf32> -> vector<1x8x128xf32>
    "tpu.trace_stop"() : () -> ()
    %120 = arith.addf %116, %119 : vector<1x8x128xf32>
    %c0_67 = arith.constant 0 : index
    %c0_68 = arith.constant 0 : index
    %c128_69 = arith.constant 128 : index
    %121 = vector.load %arg20[%c0_67, %c0_68, %c128_69] : memref<1x8x256xf32, #tpu.memory_space<vmem>>, vector<1x8x128xf32>
    tpu.vector_store %arg20[%c0_67, %c0_68, %c128_69], %120 {strides = array<i32>} : memref<1x8x256xf32, #tpu.memory_space<vmem>>, vector<1x8x128xf32>,
    %c1_70 = arith.constant 1 : index
    %c0_71 = arith.constant 0 : index
    %c0_72 = arith.constant 0 : index
    %122 = vector.load %arg18[%c1_70, %c0_71, %c0_72] : memref<2x8x1xf32, #tpu.memory_space<vmem>>, vector<1x8x1xf32>
    tpu.vector_store %arg18[%c1_70, %c0_71, %c0_72], %102 {strides = array<i32>} : memref<2x8x1xf32, #tpu.memory_space<vmem>>, vector<1x8x1xf32>,
    %c1_i32 = arith.constant 1 : i32
    %123 = arith.cmpi eq, %arg1, %c1_i32 : i32
    %124 = arith.extui %123 : i1 to i32
    %c0_i32_73 = arith.constant 0 : i32
    %125 = arith.cmpi ne, %124, %c0_i32_73 : i32
    scf.if %125 {
      %c0_74 = arith.constant 0 : index
      %c0_75 = arith.constant 0 : index
      %c0_76 = arith.constant 0 : index
      %126 = vector.load %arg19[%c0_74, %c0_75, %c0_76] : memref<2x8x1xf32, #tpu.memory_space<vmem>>, vector<1x8x1xf32>
      %127 = tpu.reciprocal %126 {approx = true} : vector<1x8x1xf32> -> vector<1x8x1xf32>
      %c0_77 = arith.constant 0 : index
      %c0_78 = arith.constant 0 : index
      %c0_79 = arith.constant 0 : index
      %128 = vector.load %arg20[%c0_77, %c0_78, %c0_79] : memref<1x8x256xf32, #tpu.memory_space<vmem>>, vector<1x8x128xf32>
      %129 = vector.broadcast %127 : vector<1x8x1xf32> to vector<1x8x128xf32>
      %130 = arith.mulf %128, %129 : vector<1x8x128xf32>
      %c0_80 = arith.constant 0 : index
      %c0_81 = arith.constant 0 : index
      %c0_82 = arith.constant 0 : index
      %131 = vector.load %arg20[%c0_80, %c0_81, %c0_82] : memref<1x8x256xf32, #tpu.memory_space<vmem>>, vector<1x8x128xf32>
      tpu.vector_store %arg20[%c0_80, %c0_81, %c0_82], %130 {strides = array<i32>} : memref<1x8x256xf32, #tpu.memory_space<vmem>>, vector<1x8x128xf32>,
      %c1_83 = arith.constant 1 : index
      %c0_84 = arith.constant 0 : index
      %c0_85 = arith.constant 0 : index
      %132 = vector.load %arg19[%c1_83, %c0_84, %c0_85] : memref<2x8x1xf32, #tpu.memory_space<vmem>>, vector<1x8x1xf32>
      %133 = tpu.reciprocal %132 {approx = true} : vector<1x8x1xf32> -> vector<1x8x1xf32>
      %c0_86 = arith.constant 0 : index
      %c0_87 = arith.constant 0 : index
      %c128_88 = arith.constant 128 : index
      %134 = vector.load %arg20[%c0_86, %c0_87, %c128_88] : memref<1x8x256xf32, #tpu.memory_space<vmem>>, vector<1x8x128xf32>
      %135 = vector.broadcast %133 : vector<1x8x1xf32> to vector<1x8x128xf32>
      %136 = arith.mulf %134, %135 : vector<1x8x128xf32>
      %c0_89 = arith.constant 0 : index
      %c0_90 = arith.constant 0 : index
      %c128_91 = arith.constant 128 : index
      %137 = vector.load %arg20[%c0_89, %c0_90, %c128_91] : memref<1x8x256xf32, #tpu.memory_space<vmem>>, vector<1x8x128xf32>
      tpu.vector_store %arg20[%c0_89, %c0_90, %c128_91], %136 {strides = array<i32>} : memref<1x8x256xf32, #tpu.memory_space<vmem>>, vector<1x8x128xf32>,
      %c0_92 = arith.constant 0 : index
      %c0_93 = arith.constant 0 : index
      %c0_94 = arith.constant 0 : index
      %138 = vector.load %arg20[%c0_92, %c0_93, %c0_94] : memref<1x8x256xf32, #tpu.memory_space<vmem>>, vector<1x8x256xf32>
      %139 = vector.shape_cast %138 : vector<1x8x256xf32> to vector<8x256xf32>
      %140 = arith.truncf %139 : vector<8x256xf32> to vector<8x256xbf16>
      %c0_95 = arith.constant 0 : index
      %c0_96 = arith.constant 0 : index
      %c0_97 = arith.constant 0 : index
      %141 = vector.load %arg2[%c0_95, %c0_96, %c0_97] : memref<1x8x128xf32, #tpu.memory_space<vmem>>, vector<1x8x128xf32>
      %142 = vector.shape_cast %141 : vector<1x8x128xf32> to vector<8x128xf32>
      %c0_98 = arith.constant 0 : index
      %c0_99 = arith.constant 0 : index
      %143 = vector.load %arg10[%c0_98, %c0_99] : memref<256x128xbf16, #tpu.memory_space<vmem>>, vector<256x128xbf16>
      %cst_100 = arith.constant dense<0.000000e+00> : vector<8x128xf32>
      %144 = tpu.matmul %140, %143, %cst_100 {dimension_numbers = #tpu.dot_dimension_numbers<[1], [0], [0], [1], [0, 0, 1, 1], [], []>} : vector<8x256xbf16>, vector<256x128xbf16>, vector<8x128xf32> -> vector<8x128xf32>
      %c0_101 = arith.constant 0 : index
      %c0_102 = arith.constant 0 : index
      %145 = vector.load %arg11[%c0_101, %c0_102] : memref<1x128xf32, #tpu.memory_space<vmem>>, vector<1x128xf32>
      %146 = vector.shape_cast %145 : vector<1x128xf32> to vector<128xf32>
      %147 = vector.shape_cast %146 : vector<128xf32> to vector<1x128xf32>
      %148 = vector.broadcast %147 : vector<1x128xf32> to vector<8x128xf32>
      %149 = arith.addf %144, %148 : vector<8x128xf32>
      %150 = arith.addf %149, %142 : vector<8x128xf32>
      %151 = arith.truncf %150 : vector<8x128xf32> to vector<8x128xbf16>
      %c0_103 = arith.constant 0 : index
      %c0_104 = arith.constant 0 : index
      %152 = vector.load %arg12[%c0_103, %c0_104] : memref<128x128xbf16, #tpu.memory_space<vmem>>, vector<128x128xbf16>
      %cst_105 = arith.constant dense<0.000000e+00> : vector<8x128xf32>
      %153 = tpu.matmul %151, %152, %cst_105 {dimension_numbers = #tpu.dot_dimension_numbers<[1], [0], [0], [1], [0, 0, 1, 1], [], []>} : vector<8x128xbf16>, vector<128x128xbf16>, vector<8x128xf32> -> vector<8x128xf32>
      %c0_106 = arith.constant 0 : index
      %c0_107 = arith.constant 0 : index
      %154 = vector.load %arg13[%c0_106, %c0_107] : memref<1x128xf32, #tpu.memory_space<vmem>>, vector<1x128xf32>
      %155 = vector.shape_cast %154 : vector<1x128xf32> to vector<128xf32>
      %156 = vector.shape_cast %155 : vector<128xf32> to vector<1x128xf32>
      %157 = vector.broadcast %156 : vector<1x128xf32> to vector<8x128xf32>
      %158 = arith.addf %153, %157 : vector<8x128xf32>
      %cst_108 = arith.constant 5.000000e-01 : f32
      %159 = vector.broadcast %cst_108 : f32 to vector<8x128xf32>
      %160 = arith.mulf %159, %158 : vector<8x128xf32>
      %cst_109 = arith.constant 0.707106769 : f32
      %161 = vector.broadcast %cst_109 : f32 to vector<8x128xf32>
      %162 = arith.mulf %158, %161 : vector<8x128xf32>
      %163 = math.erf %162 : vector<8x128xf32>
      %cst_110 = arith.constant 1.000000e+00 : f32
      %164 = vector.broadcast %cst_110 : f32 to vector<8x128xf32>
      %165 = arith.addf %164, %163 : vector<8x128xf32>
      %166 = arith.mulf %160, %165 : vector<8x128xf32>
      %167 = arith.truncf %166 : vector<8x128xf32> to vector<8x128xbf16>
      %c0_111 = arith.constant 0 : index
      %c0_112 = arith.constant 0 : index
      %168 = vector.load %arg14[%c0_111, %c0_112] : memref<128x128xbf16, #tpu.memory_space<vmem>>, vector<128x128xbf16>
      %cst_113 = arith.constant dense<0.000000e+00> : vector<8x128xf32>
      %169 = tpu.matmul %167, %168, %cst_113 {dimension_numbers = #tpu.dot_dimension_numbers<[1], [0], [0], [1], [0, 0, 1, 1], [], []>} : vector<8x128xbf16>, vector<128x128xbf16>, vector<8x128xf32> -> vector<8x128xf32>
      %c0_114 = arith.constant 0 : index
      %c0_115 = arith.constant 0 : index
      %170 = vector.load %arg15[%c0_114, %c0_115] : memref<1x128xf32, #tpu.memory_space<vmem>>, vector<1x128xf32>
      %171 = vector.shape_cast %170 : vector<1x128xf32> to vector<128xf32>
      %172 = vector.shape_cast %171 : vector<128xf32> to vector<1x128xf32>
      %173 = vector.broadcast %172 : vector<1x128xf32> to vector<8x128xf32>
      %174 = arith.addf %169, %173 : vector<8x128xf32>
      %175 = arith.addf %174, %150 : vector<8x128xf32>
      %176 = vector.shape_cast %175 : vector<8x128xf32> to vector<1x8x128xf32>
      %c0_116 = arith.constant 0 : index
      %c0_117 = arith.constant 0 : index
      %c0_118 = arith.constant 0 : index
      %177 = vector.load %arg16[%c0_116, %c0_117, %c0_118] : memref<1x8x128xf32, #tpu.memory_space<vmem>>, vector<1x8x128xf32>
      tpu.vector_store %arg16[%c0_116, %c0_117, %c0_118], %176 {strides = array<i32>} : memref<1x8x128xf32, #tpu.memory_space<vmem>>, vector<1x8x128xf32>,
    } else {
    }
    return
  }
  func.func @transform_0(%arg0: i32, %arg1: i32) -> (i32, i32, i32) {
    %c0_i32 = arith.constant 0 : i32
    %c0_i32_0 = arith.constant 0 : i32
    %c0_i32_1 = arith.constant 0 : i32
    return %arg0, %c0_i32, %c0_i32_0 : i32, i32, i32
  }
  func.func @transform_1(%arg0: i32, %arg1: i32) -> (i32, i32, i32) {
    %c0_i32 = arith.constant 0 : i32
    %c0_i32_0 = arith.constant 0 : i32
    return %arg0, %arg1, %c0_i32 : i32, i32, i32
  }
  func.func @transform_2(%arg0: i32, %arg1: i32) -> (i32, i32, i32) {
    %c0_i32 = arith.constant 0 : i32
    %c0_i32_0 = arith.constant 0 : i32
    return %arg0, %arg1, %c0_i32 : i32, i32, i32
  }
  func.func @transform_3(%arg0: i32, %arg1: i32) -> (i32, i32) {
    %c0_i32 = arith.constant 0 : i32
    %c0_i32_0 = arith.constant 0 : i32
    %c0_i32_1 = arith.constant 0 : i32
    return %c0_i32, %c0_i32_0 : i32, i32
  }
  func.func @transform_4(%arg0: i32, %arg1: i32) -> (i32, i32) {
    %c0_i32 = arith.constant 0 : i32
    %c0_i32_0 = arith.constant 0 : i32
    %c0_i32_1 = arith.constant 0 : i32
    return %c0_i32, %c0_i32_0 : i32, i32
  }
  func.func @transform_5(%arg0: i32, %arg1: i32) -> (i32, i32) {
    %c0_i32 = arith.constant 0 : i32
    %c0_i32_0 = arith.constant 0 : i32
    %c0_i32_1 = arith.constant 0 : i32
    return %c0_i32, %c0_i32_0 : i32, i32
  }
  func.func @transform_6(%arg0: i32, %arg1: i32) -> (i32, i32) {
    %c0_i32 = arith.constant 0 : i32
    %c0_i32_0 = arith.constant 0 : i32
    %c0_i32_1 = arith.constant 0 : i32
    return %c0_i32, %c0_i32_0 : i32, i32
  }
  func.func @transform_7(%arg0: i32, %arg1: i32) -> (i32, i32) {
    %c0_i32 = arith.constant 0 : i32
    %c0_i32_0 = arith.constant 0 : i32
    %c0_i32_1 = arith.constant 0 : i32
    return %c0_i32, %c0_i32_0 : i32, i32
  }
  func.func @transform_8(%arg0: i32, %arg1: i32) -> (i32, i32) {
    %c0_i32 = arith.constant 0 : i32
    %c0_i32_0 = arith.constant 0 : i32
    %c0_i32_1 = arith.constant 0 : i32
    return %c0_i32, %c0_i32_0 : i32, i32
  }
  func.func @transform_9(%arg0: i32, %arg1: i32) -> (i32, i32) {
    %c0_i32 = arith.constant 0 : i32
    %c0_i32_0 = arith.constant 0 : i32
    %c0_i32_1 = arith.constant 0 : i32
    return %c0_i32, %c0_i32_0 : i32, i32
  }
  func.func @transform_10(%arg0: i32, %arg1: i32) -> (i32, i32) {
    %c0_i32 = arith.constant 0 : i32
    %c0_i32_0 = arith.constant 0 : i32
    %c0_i32_1 = arith.constant 0 : i32
    return %c0_i32, %c0_i32_0 : i32, i32
  }
  func.func @transform_11(%arg0: i32, %arg1: i32) -> (i32, i32) {
    %c0_i32 = arith.constant 0 : i32
    %c0_i32_0 = arith.constant 0 : i32
    %c0_i32_1 = arith.constant 0 : i32
    return %c0_i32, %c0_i32_0 : i32, i32
  }
  func.func @transform_12(%arg0: i32, %arg1: i32) -> (i32, i32) {
    %c0_i32 = arith.constant 0 : i32
    %c0_i32_0 = arith.constant 0 : i32
    %c0_i32_1 = arith.constant 0 : i32
    return %c0_i32, %c0_i32_0 : i32, i32
  }
  func.func @transform_13(%arg0: i32, %arg1: i32) -> (i32, i32) {
    %c0_i32 = arith.constant 0 : i32
    %c0_i32_0 = arith.constant 0 : i32
    %c0_i32_1 = arith.constant 0 : i32
    return %c0_i32, %c0_i32_0 : i32, i32
  }
  func.func @transform_14(%arg0: i32, %arg1: i32) -> (i32, i32, i32) {
    %c0_i32 = arith.constant 0 : i32
    %c0_i32_0 = arith.constant 0 : i32
    %c0_i32_1 = arith.constant 0 : i32
    return %arg0, %c0_i32, %c0_i32_0 : i32, i32, i32
  }
}

</mosaic_0001>

<bundles_post_ra>
// kernel: tpu_custom_call.1
= control target key start
LH: loop header
LB: loop body
LE: loop exit
PB: predicated region body
PF: predicated region fallthrough
CT: control target
= control target key end

     0   :  { %s3460_s0 = inlined_call_operand.hbm [shape: f32[2,8,128], index: 0, kind: input, shape index: {}]   ;;  %s3461_s1 = inlined_call_operand.hbm [shape: f32[2,16,128], index: 1, kind: input, shape index: {}]   ;;  %s3462_s2 = inlined_call_operand.hbm [shape: f32[2,16,128], index: 2, kind: input, shape index: {}]   ;;  %s3463_s3 = inlined_call_operand.vmem [shape: f32[1,128], index: 3, kind: input, shape index: {}]   ;;  %s3464_s4 = inlined_call_operand.vmem [shape: f32[1,128], index: 4, kind: input, shape index: {}]   ;;  %s3465_s5 = inlined_call_operand.hbm [shape: bf16[128,256], index: 5, kind: input, shape index: {}]   ;;  %s3466_s6 = inlined_call_operand.hbm [shape: bf16[128,256], index: 6, kind: input, shape index: {}]   ;;  %s3467_s7 = inlined_call_operand.hbm [shape: bf16[128,256], index: 7, kind: input, shape index: {}]   ;;  %s3468_s8 = inlined_call_operand.hbm [shape: bf16[256,128], index: 8, kind: input, shape index: {}]   ;;  %s3469_s9 = inlined_call_operand.vmem [shape: f32[1,128], index: 9, kind: input, shape index: {}]   ;;  %s3470_s10 = inlined_call_operand.hbm [shape: bf16[128,128], index: 10, kind: input, shape index: {}]   ;;  %s3471_s11 = inlined_call_operand.vmem [shape: f32[1,128], index: 11, kind: input, shape index: {}]   ;;  %s3472_s12 = inlined_call_operand.hbm [shape: bf16[128,128], index: 12, kind: input, shape index: {}]   ;;  %s3473_s13 = inlined_call_operand.vmem [shape: f32[1,128], index: 13, kind: input, shape index: {}]   ;;  %s3474_s14 = inlined_call_operand.hbm [shape: f32[2,8,128], index: 14, kind: output, shape index: {}]  }
   0x1   :  { %3490 = sst [smem:[#allocation37_spill]] %s3460_s0 }
   0x2   :  { %3491 = sst [smem:[#allocation38_spill]] %s3461_s1 }
   0x3   :  { %3492 = sst [smem:[#allocation39_spill]] %s3462_s2 }
   0x4   :  { %3493 = sst [smem:[#allocation40_spill]] %s3463_s3 }
   0x5   :  { %3494 = sst [smem:[#allocation41_spill]] %s3464_s4 }
   0x6   :  { %3495 = sst [smem:[#allocation42_spill]] %s3465_s5 }
   0x7   :  { %3496 = sst [smem:[#allocation43_spill]] %s3466_s6 }
   0x8   :  { %3497 = sst [smem:[#allocation44_spill]] %s3467_s7 }
   0x9   :  { %3498 = sst [smem:[#allocation45_spill]] %s3468_s8 }
   0xa   :  { %3499 = sst [smem:[#allocation46_spill]] %s3469_s9 }
   0xb   :  { %3500 = sst [smem:[#allocation47_spill]] %s3470_s10 }
   0xc   :  { %3501 = sst [smem:[#allocation48_spill]] %s3471_s11 }
   0xd   :  { %3502 = sst [smem:[#allocation49_spill]] %s3472_s12 }
   0xe   :  { %3503 = sst [smem:[#allocation50_spill]] %s3473_s13 }
   0xf   :  { %3504 = sst [smem:[#allocation51_spill]] %s3474_s14 }
  0x10   :  { %19 = vsyncpa [#allocation7], 0 }
  0x11   :  { %21 = vsyncpa [#allocation7 + $0x1], 0 }
  0x12   :  { %22 = vsyncpa [#allocation10], 0 }
  0x13   :  { %24 = vsyncpa [#allocation10 + $0x1], 0 }
  0x14   :  { %25 = vsyncpa [#allocation13], 0 }
  0x15   :  { %26 = vsyncpa [#allocation16], 0 }
  0x16   :  { %27 = vsyncpa [#allocation19], 0 }
  0x17   :  { %28 = vsyncpa [#allocation8], 0 }
  0x18   :  { %30 = vsyncpa [#allocation8 + $0x1], 0  ;;  %s3063_s29 = smov 0   ;;  %s3065_s30 = smov 0  }
  0x19   :  { %s3067_s15 = smov 0   ;;  %s3069_s16 = smov 0  }
  0x1a   :  { %s3071_s17 = smov 0   ;;  %s3073_s18 = smov 0  }
  0x1b   :  { %s3075_s19 = smov 0   ;;  %s3077_s20 = smov 0  }
  0x1c   :  { %s3079_s21 = smov 0   ;;  %s3081_s22 = smov 0  }
  0x1d   :  { %s3083_s23 = smov 0  }
  0x1e LB: > { %3505 = sst [smem:[#allocation28_spill]] %s2934_s30  ;;  %s3119_s24 = sadd.s32 4294967295, %s2970_s23   ;;  %s2970_s23 = sphi %s3083_s23, %s36_s23   ;;  %s2966_s22 = sphi %s3081_s22, %s3553_s22   ;;  %s2962_s21 = sphi %s3079_s21, %s3552_s21   ;;  %s2958_s20 = sphi %s3077_s20, %s3551_s20   ;;  %s2954_s19 = sphi %s3075_s19, %s3550_s19   ;;  %s2950_s18 = sphi %s3073_s18, %s3558_s18   ;;  %s2946_s17 = sphi %s3071_s17, %s3557_s17   ;;  %s2942_s16 = sphi %s3069_s16, %s3556_s16   ;;  %s2938_s15 = sphi %s3067_s15, %s3555_s15   ;;  %s2934_s30 = sphi %s3065_s30, %s3554_s30   ;;  %s2930_s29 = sphi %s3063_s29, %s3548_s29  }
  0x1f   : > { %3506 = sst [smem:[#allocation29_spill]] %s2954_s19  ;;  %p1912_p0 = scmp.ge.s32.totalorder %s2970_s23, 1 }
  0x20   : > { %3507 = sst [smem:[#allocation30_spill]] %s2958_s20  ;;  %p69_p1 = scmp.eq.s32.totalorder %s3119_s24, 0 }
  0x21   : > { %3508 = sst [smem:[#allocation31_spill]] %s2962_s21  ;;  %p392_p2 = scmp.lt.s32.totalorder %s2970_s23, 5 }
  0x22   : > { %3509 = sst [smem:[#allocation32_spill]] %s2966_s22  ;;  %s2972_s14 = smov [#allocation12]  }
  0x23   : > { %s3510_s5 = sld [smem:[#allocation42_spill]]  ;;  %p3127_p3 = pnand %p1912_p0, %p392_p2 }
  0x24   : > { %s411_s20 = sshll.u32 %s2972_s14, 4  ;;  %s3514_s7 = sld [smem:[#allocation44_spill]]  ;;  %s412_s20 = int_to_ptr.vmem [resolvable:$true] %s411_s20 }
  0x25   : > { %s3511_s28 = scalar_select %p3127_p3, 1, 0 }
  0x26   : > { %p2380_p4 = pneg %p3127_p3  ;;  %s3480_s26 = smov 128  }
  0x27   : > { %3512 = sst [smem:[#allocation33_spill]] %s3511_s28  ;;  %s2975_s14 = smov [#allocation15]  }
  0x28   : > { %p3135_p5 = pnand %p2380_p4, %p69_p1  ;;  %s439_s19 = sshll.u32 %s2975_s14, 4  ;;  %s440_s19 = int_to_ptr.vmem [resolvable:$true] %s439_s19 }
  0x29   : > { %s409_s27 = sshll.u32 %s3510_s5, 4  ;;  %s3481_s5 = smov 8   ;;  %s410_s27 = int_to_ptr.hbm [resolvable:$true] %s409_s27 }
  0x2a   : > { %s437_s25 = sshll.u32 %s3514_s7, 4  ;;  %s3515_s10 = sld [smem:[#allocation47_spill]]  ;;  %s438_s25 = int_to_ptr.hbm [resolvable:$true] %s437_s25 }
  0x2b   : > { %2383 = dma.hbm_to_vmem [thread:$0]  (!%p3135_p5), %s410_s27, 2048, %s412_s20, [#allocation13], %s3480_s26, %s3480_s26, %s3481_s5  }
  0x2c   : > { %2389 = dma.hbm_to_vmem [thread:$0]  (!%p3135_p5), %s438_s25, 2048, %s440_s19, [#allocation16], %s3480_s26, %s3480_s26, %s3481_s5  }
  0x2d   : > { %s2976_s20 = smov [#allocation18]   ;;  %s3476_s14 = smov 64  }
  0x2e   : > { %s470_s27 = sshll.u32 %s2976_s20, 4  ;;  %s3478_s4 = smov 4   ;;  %s471_s27 = int_to_ptr.vmem [resolvable:$true] %s470_s27 }
  0x2f   : > { %s45_s19 = sadd.s32 1, %s2962_s21  ;;  %s48_s25 = sadd.s32 1, %s2966_s22 }
  0x30   : > { %s468_s7 = sshll.u32 %s3515_s10, 4  ;;  %p46_p6 = scmp.ge.s32.totalorder %s45_s19, 2  ;;  %s469_s7 = int_to_ptr.hbm [resolvable:$true] %s468_s7 }
  0x31   : > { %2395 = dma.hbm_to_vmem [thread:$0]  (!%p3135_p5), %s469_s7, 1024, %s471_s27, [#allocation19], %s3476_s14, %s3476_s14, %s3478_s4  }
  0x32   : > { %p63_p7 = scmp.eq.s32.totalorder %s2970_s23, 0  ;;  %s83_s9 = sadd.s32 1, %s2938_s15 }
  0x33   : > { %s3560_s19 = smov (%p46_p6, %s45_s19), 0  ;;  %s3562_s25 = smov (!%p46_p6, %s48_s25), %s2966_s22 }
  0x34   : > { %3516 = sst [smem:[#allocation34_spill]] %s3560_s19  ;;  %s79_s11 = ssub.s32 %s2962_s21, %s3560_s19 }
  0x35   : > { %p90_p8 = scmp.ne.s32.totalorder %s2938_s15, %s2934_s30  ;;  %p50_p9 = scmp.ge.s32.totalorder %s3562_s25, 2 }
  0x36   : > { %p96_p10 = scmp.ne.s32.totalorder %s2934_s30, %s2930_s29  ;;  %p2419_p12 = scmp.lt.s32.totalorder %s2970_s23, 4 }
  0x37   : > { %p3175_p11 = por %p90_p8, %p63_p7  ;;  %s3564_s25 = smov (%p50_p9, %s3562_s25), 0 }
  0x38   : > { %3518 = sst [smem:[#allocation35_spill]] %s3564_s25  ;;  %p3184_p13 = por %p96_p10, %p69_p1 }
  0x39   : > { %s523_s27 = sand.u32 1, %s2970_s23   ;;  %s3191_s14 = ssub.s32 %s2966_s22, %s3564_s25 }
  0x3a   : > { %s3519_s20 = scalar_select %p3184_p13, 1, 0 }
  0x3b   : > { %p53_p0 = scmp.eq.s32.totalorder %s3191_s14, 0  ;;  %s80_s29 = sor.u32 %s79_s11, %s3191_s14 }
  0x3c   : > { %3520 = sst [smem:[#allocation36_spill]] %s3519_s20  ;;  %p81_p2 = scmp.eq.s32.totalorder %s80_s29, 0 }
  0x3d   : > { %s525_s4 = sand.u32 1, %s2938_s15   ;;  %s1923_s5 = sshll.u32 %s2966_s22, 1 }
  0x3e   : > { %s3196_s26 = sshll.u32 %s525_s4, 3  ;;  %s531_s19 = sadd.s32 %s2962_s21, %s1923_s5 }
  0x3f   : > { %s3200_s10 = scalar_select %p81_p2, %s2938_s15, %s83_s9  }
  0x40   : > { %s1924_s3 = sshll.u32 %s531_s19, 3  ;;  %s527_s20 = scalar_lea.vmem [#allocation9], %s3196_s26 }
  0x41   : > { %s537_s30 = sshll.u32 %s527_s20, 4  ;;  %s3521_s1 = sld [smem:[#allocation38_spill]]  ;;  %s538_s30 = int_to_ptr.vmem [resolvable:$true] %s537_s30 }
  0x42   : > { %p3211_p4 = pnand %p2419_p12, %p3175_p11  ;;  %s3523_s2 = sld [smem:[#allocation39_spill]] }
  0x43   : > { %s3220_s11 = scalar_lea.sflag [#allocation10], %s523_s27  ;;  %s3524_s6 = sld [smem:[#allocation43_spill]] }
  0x44   : > { %s2979_s7 = smov [#allocation14]   ;;  %s3525_s8 = sld [smem:[#allocation45_spill]] }
  0x45   : > { %s425_s20 = sshll.u32 %s2979_s7, 4  ;;  %s3526_s9 = smov 8   ;;  %s426_s20 = int_to_ptr.vmem [resolvable:$true] %s425_s20 }
  0x46   : > { %s3528_s7 = sld [smem:[#allocation49_spill]]  ;;  %p62_p6 = scmp.ne.s32.totalorder %s2950_s18, %s2946_s17 }
  0x47   : > { %s533_s0 = scalar_lea.hbm %s3521_s1, %s1924_s3  ;;  %s3530_s1 = smov 64  }
  0x48   : > { %s535_s12 = sshll.u32 %s533_s0, 4  ;;  %s3218_s19 = scalar_lea.hbm %s3523_s2, %s1924_s3  ;;  %s536_s12 = int_to_ptr.hbm [resolvable:$true] %s535_s12 }
  0x49   : > { %2405 = dma.hbm_to_vmem [thread:$0]  (!%p3211_p4), %s536_s12, 128, %s538_s30, %s3220_s11  }
  0x4a   : > { %s423_s25 = sshll.u32 %s3524_s6, 4  ;;  %s451_s27 = sshll.u32 %s3525_s8, 4  ;;  %s424_s25 = int_to_ptr.hbm [resolvable:$true] %s423_s25  ;;  %s452_s27 = int_to_ptr.hbm [resolvable:$true] %s451_s27 }
  0x4b   : > { %s3527_s12 = smov 128   ;;  %s2980_s30 = smov [#allocation17]  }
  0x4c   : > { %2386 = dma.hbm_to_vmem [thread:$0]  (!%p3135_p5), %s424_s25, 2048, %s426_s20, [#allocation13], %s3527_s12, %s3527_s12, %s3526_s9  }
  0x4d   : > { %s453_s5 = sshll.u32 %s2980_s30, 4  ;;  %s485_s29 = sshll.u32 %s3528_s7, 4  ;;  %s454_s5 = int_to_ptr.vmem [resolvable:$true] %s453_s5  ;;  %s486_s29 = int_to_ptr.hbm [resolvable:$true] %s485_s29 }
  0x4e   : > { %s3529_s3 = smov 4   ;;  %s2981_s25 = smov [#allocation20]  }
  0x4f   : > { %2392 = dma.hbm_to_vmem [thread:$0]  (!%p3135_p5), %s452_s27, 2048, %s454_s5, [#allocation16], %s3530_s1, %s3530_s1, %s3529_s3  }
  0x50   : > { %s487_s20 = sshll.u32 %s2981_s25, 4  ;;  %s1911_s9 = sadd.s32 4294967294, %s2970_s23   ;;  %s488_s20 = int_to_ptr.vmem [resolvable:$true] %s487_s20 }
  0x51   : > { %2398 = dma.hbm_to_vmem [thread:$0]  (!%p3135_p5), %s486_s29, 1024, %s488_s20, [#allocation19], %s3530_s1, %s3530_s1, %s3529_s3  }
  0x52   : > { %s55_s12 = sadd.s32 1, %s2950_s18  ;;  %p3260_p8 = por %p63_p7, %p62_p6 }
  0x53   : > { %s3256_s30 = scalar_select %p53_p0, %s2950_s18, %s55_s12  }
  0x54   : > { %p68_p9 = scmp.ne.s32.totalorder %s2946_s17, %s2942_s16  ;;  %p379_p10 = scmp.eq.s32.totalorder %s3119_s24, 3 }
  0x55   : > { %p385_p11 = scmp.eq.s32.totalorder %s1911_s9, 3  ;;  %s504_s13 = sand.u32 1, %s2950_s18  }
  0x56   : > { %p3269_p5 = por %p69_p1, %p68_p9  ;;  %p3274_p0 = por %p379_p10, %p62_p6 }
  0x57   : > { %p3278_p7 = por %p385_p11, %p68_p9  ;;  %s1920_s5 = sshll.u32 %s504_s13, 3 }
  0x58   : > { %s1921_s28 = sshll.u32 %s2966_s22, 3  ;;  %s3535_s3 = sld [smem:[#allocation37_spill]] }
  0x59   : > { %s508_s20 = scalar_lea.vmem [#allocation6], %s1920_s5  ;;  %p2400_p2 = pnand %p2419_p12, %p3260_p8 }
  0x5a   : > { %s516_s9 = sshll.u32 %s508_s20, 4  ;;  %s556_s2 = sshll.u32 %s3218_s19, 4  ;;  %s517_s9 = int_to_ptr.vmem [resolvable:$true] %s516_s9  ;;  %s557_s2 = int_to_ptr.hbm [resolvable:$true] %s556_s2 }
  0x5b   : > { %s548_s6 = scalar_lea.vmem [#allocation11], %s3196_s26  ;;  %s505_s21 = scalar_lea.sflag [#allocation7], %s504_s13 }
  0x5c   : > { %s558_s8 = sshll.u32 %s548_s6, 4  ;;  %567 = sbr.rel (%p3127_p3) target bundleno = 1851 (0x73b), region = 76  ;;  %s559_s8 = int_to_ptr.vmem [resolvable:$true] %s558_s8 }
  0x5d   : > { %2408 = dma.hbm_to_vmem [thread:$0]  (!%p3211_p4), %s557_s2, 128, %s559_s8, %s3220_s11  }
  0x5e   : > { %s512_s25 = scalar_lea.hbm %s3535_s3, %s1921_s28  ;;  %s3298_s5 = sand.u32 (!%p3127_p3), 1, %s2946_s17  }
  0x5f   : > { %s514_s12 = sshll.u32 %s512_s25, 4  ;;  %s1929_s0 = sshll.u32 (!%p3127_p3), %s3298_s5, 3  ;;  %s515_s12 = int_to_ptr.hbm [resolvable:$true] %s514_s12 }
  0x60   : > { %2402 = dma.hbm_to_vmem [thread:$0]  (!%p2400_p2), %s515_s12, 128, %s517_s9, %s505_s21  }
  0x61   : > { %s570_s28 = scalar_lea.sflag [#allocation7], %s3298_s5  ;;  %s3302_s19 = scalar_lea.vmem [#allocation6], %s1929_s0 }
  0x62   : > { %2905 = dma.done.wait (%p3269_p5), %s570_s28, 128  }
  0x63   : > { %2907 = vsyncadd (%p3269_p5), %s570_s28, 4294967168  ;;  %s3537_s2 = sld [smem:[#allocation28_spill]]  ;;  %s579_s8 = sand.u32 1, %s3119_s24  }
  0x64   : > { %s580_s26 = scalar_lea.sflag [#allocation10], %s579_s8 }
  0x69   : > { %s581_s21 = sand.u32 1, %s3537_s2  }
  0x6a   : > { %s3310_s22 = sshll.u32 %s581_s21, 3 }
  0x6b   : > { %s583_s4 = scalar_lea.vmem [#allocation9], %s3310_s22 }
  0x6c   : > { %2909 = dma.done.wait (%p3184_p13), %s580_s26, 256  }
  0x6d   : > { %2911 = vsyncadd (%p3184_p13), %s580_s26, 4294967040  ;;  %s593_s11 = scalar_lea.vmem [#allocation11], %s3310_s22 }
  0x6e   : > { %2913 = dma.done.wait (%p69_p1), [#allocation13], 4096  }
  0x6f   : > { %2915 = vsyncadd (%p69_p1), [#allocation13], 4294963200 }
  0x70   : > { %2917 = dma.done.wait (%p69_p1), [#allocation16], 4096  }
  0x71   : > { %2919 = vsyncadd (%p69_p1), [#allocation16], 4294963200 }
  0x72   : > { %2921 = dma.done.wait (%p69_p1), [#allocation19], 2048  }
  0x73   : > { %2923 = vsyncadd (%p69_p1), [#allocation19], 4294965248  ;;  %s3539_s7 = sld [smem:[#allocation40_spill]]  ;;  %s3340_s20 = scalar_lea.vmem [#allocation21], %s1929_s0 }
  0x74   : > { %s3540_s25 = sld [smem:[#allocation41_spill]] }
  0x75   : > { %s3541_s9 = sld [smem:[#allocation29_spill]] }
  0x79   : > { %v3333_v0 = vld [vmem:[%s3539_s7] sm:$0x1] }
  0x7a   : > { %v3338_v1 = vld [vmem:[%s3540_s25] sm:$0x1] }
  0x7b   : > { %p1939_p3 = scmp.ne.s32.totalorder %s3541_s9, 0 }
  0x7d   : > { %685 = sbr.rel (%p1939_p3) target bundleno = 421 (0x1a5), region = 116 }
  0x82   : > { %v3344_v2 = vld [vmem:[%s3302_s19] sm:$0xff]  ;;  %v2982_v9 = vmov 128.0   ;;  %v1990_v11 = vld [vmem:[#allocation12 + $0x60] sm:$0xf]  ;;  %v2281_v12 = vld [vmem:[#allocation12 + $0x64] sm:$0xf0] }
  0x83   : > { %687 = vadd.xlane.f32.xlu0 %v3344_v2  ;;  %v697_v3 = vmul.f32 %v3344_v2, %v3344_v2  ;;  %v1998_v4 = vld [vmem:[#allocation12 + $0x70] sm:$0xf]  ;;  %v2283_v5 = vld [vmem:[#allocation12 + $0x74] sm:$0xf0]  ;;  %v2282_v6 = vld [vmem:[#allocation12 + $0x74] sm:$0xf]  ;;  %2531 = vrcp.f32 %v2982_v9  ;;  %v1991_v14 = vor.u32 %v2281_v12, %v1990_v11 }
  0x84   : > { %v1999_v7 = vor.u32 %v2283_v5, %v1998_v4  ;;  %v2000_v8 = vld [vmem:[#allocation12 + $0x78] sm:$0xf0]  ;;  %v2280_v13 = vld [vmem:[#allocation12 + $0x64] sm:$0xf]  ;;  %v1992_v15 = vld [vmem:[#allocation12 + $0x68] sm:$0xf0] }
  0x85   : > { %v2003_v10 = vor.u32 %v2282_v6, %v2000_v8  ;;  %v1995_v16 = vor.u32 %v2280_v13, %v1992_v15  ;;  %v1982_v18 = vld [vmem:[#allocation12 + $0x50] sm:$0xf]  ;;  %v2279_v19 = vld [vmem:[#allocation12 + $0x54] sm:$0xf0]  ;;  %v2278_v20 = vld [vmem:[#allocation12 + $0x54] sm:$0xf] }
  0x86   : > { %821 = vmatpush.bf16.msra.mxu0 %v1999_v7  ;;  %v1983_v21 = vor.u32 %v2279_v19, %v1982_v18  ;;  %v1984_v22 = vld [vmem:[#allocation12 + $0x58] sm:$0xf0]  ;;  %v1974_v25 = vld [vmem:[#allocation12 + $0x40] sm:$0xf]  ;;  %v2277_v26 = vld [vmem:[#allocation12 + $0x44] sm:$0xf0] }
  0x87   : > { %834 = vmatpush.bf16.msra.mxu1 %v2003_v10  ;;  %v1987_v23 = vor.u32 %v2278_v20, %v1984_v22  ;;  %v2276_v27 = vld [vmem:[#allocation12 + $0x44] sm:$0xf]  ;;  %v1975_v28 = vor.u32 %v2277_v26, %v1974_v25  ;;  %v1976_v29 = vld [vmem:[#allocation12 + $0x48] sm:$0xf0]  ;;  %v1966_v32 = vld [vmem:[#allocation12 + $0x30] sm:$0xf] }
  0x88   : > { %v1979_v30 = vor.u32 %v2276_v27, %v1976_v29  ;;  %v2275_v33 = vld [vmem:[#allocation12 + $0x34] sm:$0xf0]  ;;  %v2274_v34 = vld [vmem:[#allocation12 + $0x34] sm:$0xf]  ;;  %v1968_v36 = vld [vmem:[#allocation12 + $0x38] sm:$0xf0] }
  0x89   : > { %v2532_v17 = vpop.eup %2531  ;;  %v1967_v35 = vor.u32 %v2275_v33, %v1966_v32  ;;  %v1971_v37 = vor.u32 %v2274_v34, %v1968_v36  ;;  %v1958_v39 = vld [vmem:[#allocation12 + $0x20] sm:$0xf]  ;;  %v2273_v40 = vld [vmem:[#allocation12 + $0x24] sm:$0xf0]  ;;  %v2272_v41 = vld [vmem:[#allocation12 + $0x24] sm:$0xf] }
  0x8a   : > { %822 = vmatpush.bf16.msra.mxu0 %v1991_v14  ;;  %v690_v24 = vmul.f32 128.0, %v2532_v17  ;;  %v1959_v42 = vor.u32 %v2273_v40, %v1958_v39  ;;  %v1960_v43 = vld [vmem:[#allocation12 + $0x28] sm:$0xf0]  ;;  %v1950_v44 = vld [vmem:[#allocation12 + $0x10] sm:$0xf]  ;;  %vm694_vm0 = vweird.f32 %v2532_v17  ;;  %v717_v12 = vperm.slane %v3333_v0, 0 }
  0x8b   : > { %698 = vadd.xlane.f32.xlu0 %v697_v3  ;;  %835 = vmatpush.bf16.msra.mxu1 %v1995_v16  ;;  %v2271_v45 = vld [vmem:[#allocation12 + $0x14] sm:$0xf0]  ;;  %v1963_v46 = vor.u32 %v2272_v41, %v1960_v43  ;;  %v2270_v47 = vld [vmem:[#allocation12 + $0x14] sm:$0xf]  ;;  %v1952_v48 = vld [vmem:[#allocation12 + $0x18] sm:$0xf0] }
  0x8c   : > { %v691_v31 = vsub.f32 1.0, %v690_v24  ;;  %v1951_v50 = vor.u32 %v2271_v45, %v1950_v44  ;;  %v1955_v51 = vor.u32 %v2270_v47, %v1952_v48  ;;  %v1942_v52 = vld [vmem:[#allocation12] sm:$0xf]  ;;  %v2269_v53 = vld [vmem:[#allocation12 + $0x4] sm:$0xf0]  ;;  %v721_v15 = vperm.slane %v3338_v1, 0 }
  0x8d   : > { %v2268_v55 = vld [vmem:[#allocation12 + $0x4] sm:$0xf]  ;;  %v1944_v56 = vld [vmem:[#allocation12 + $0x8] sm:$0xf0]  ;;  %v1943_v58 = vor.u32 %v2269_v53, %v1942_v52  ;;  %vm849_vm4 = vcmask 7168   ;;  %v2983_v19 = vmov -inf  }
  0x8e   : > { %823 = vmatpush.bf16.msra.mxu0 %v1983_v21  ;;  %v692_v38 = vmul.f32 %v2532_v17, %v691_v31  ;;  %v1947_v59 = vor.u32 %v2268_v55, %v1944_v56  ;;  %850 = vst.msk [vmem:[#allocation3] sm:$0xff] %vm849_vm4, %v2983_v19  ;;  %v2984_v20 = vmov 0.0  }
  0x8f   : > { %836 = vmatpush.bf16.msra.mxu1 %v1987_v23  ;;  %851 = vst.msk [vmem:[#allocation3 + $0x8] sm:$0xff] %vm849_vm4, %v2983_v19 }
  0x90   : > { %v693_v49 = vadd.f32 %v2532_v17, %v692_v38  ;;  %852 = vst.msk [vmem:[#allocation4] sm:$0xff] %vm849_vm4, %v2984_v20 }
  0x91   : > { %853 = vst.msk [vmem:[#allocation4 + $0x8] sm:$0xff] %vm849_vm4, %v2984_v20 }
  0x92   : > { %824 = vmatpush.bf16.msra.mxu0 %v1975_v28  ;;  %v695_v57 = vsel %vm694_vm0, %v2532_v17, %v693_v49  ;;  %854 = vst [vmem:[#allocation5] sm:$0xff] %v2984_v20 }
  0x93   : > { %837 = vmatpush.bf16.msra.mxu1 %v1979_v30  ;;  %855 = vst [vmem:[#allocation5 + $0x8] sm:$0xff] %v2984_v20 }
  0x96   : > { %825 = vmatpush.bf16.msra.mxu0 %v1967_v35 }
  0x97   : > { %838 = vmatpush.bf16.msra.mxu1 %v1971_v37 }
  0x9a   : > { %826 = vmatpush.bf16.msra.mxu0 %v1959_v42 }
  0x9b   : > { %839 = vmatpush.bf16.msra.mxu1 %v1963_v46 }
  0x9e   : > { %827 = vmatpush.bf16.msra.mxu0 %v1951_v50 }
  0x9f   : > { %840 = vmatpush.bf16.msra.mxu1 %v1955_v51 }
  0xa2   : > { %828 = vmatpush.bf16.msra.mxu0 %v1943_v58 }
  0xa3   : > { %841 = vmatpush.bf16.msra.mxu1 %v1947_v59 }
  0xf6   : > { %v688_v54 = vpop.xlane.xlu0 %687 }
  0xf7   : > { %v696_v60 = vmul.f32 %v695_v57, %v688_v54 }
  0xf9   : > { %v701_v62 = vmul.f32 %v696_v60, %v696_v60  ;;  %v703_v11 = vsub.f32 %v3344_v2, %v696_v60 }
  0xfe   : > { %v699_v61 = vpop.xlane.xlu0 %698 }
  0xff   : > { %v700_v63 = vmul.f32 %v699_v61, %v695_v57 }
 0x101   : > { %v702_v3 = vsub.f32 %v700_v63, %v701_v62 }
 0x103   : > { %v704_v4 = vadd.f32 1e-05, %v702_v3 }
 0x105   : > { %2533 = vrsqrt.f32 %v704_v4  ;;  %vm711_vm2 = vweird.f32 %v704_v4 }
 0x10b   : > { %v2534_v5 = vpop.eup %2533 }
 0x10c   : > { %v706_v6 = vmul.f32 %v2534_v5, %v704_v4  ;;  %vm712_vm1 = vweird.f32 %v2534_v5 }
 0x10d   : > { %vm713_vm3 = vmor %vm711_vm2, %vm712_vm1 }
 0x10e   : > { %v707_v7 = vmul.f32 %v2534_v5, %v706_v6 }
 0x110   : > { %v708_v8 = vmul.f32 0.5, %v707_v7 }
 0x112   : > { %v709_v9 = vsub.f32 1.5, %v708_v8 }
 0x114   : > { %v710_v10 = vmul.f32 %v2534_v5, %v709_v9 }
 0x116   : > { %v714_v13 = vsel %vm713_vm3, %v2534_v5, %v710_v10 }
 0x117   : > { %v715_v14 = vmul.f32 %v714_v13, %v703_v11 }
 0x119   : > { %v719_v16 = vmul.f32 %v717_v12, %v715_v14 }
 0x11b   : > { %v723_v17 = vadd.f32 %v721_v15, %v719_v16 }
 0x11d   : > { %v724_v18 = vpack.c.bf16 %v723_v17, %v723_v17 }
 0x11f   : > { %829 = vmatmul.bf16.vlgmr.msra.gmra.mxu0 %v724_v18  ;;  %842 = vmatmul.bf16.vlgmr.msra.gmra.mxu1 %v724_v18 }
 0x19c   : > { %v830_v2 = vpop.f32.mrf.mxu0  ;;  %v843_v21 = vpop.f32.mrf.mxu1 }
 0x19d   : > { %v847_v22 = vpack.c.bf16 %v843_v21, %v830_v2 }
 0x19f   : > { %848 = vst [vmem:[#allocation2] sm:$0xff] %v847_v22 }
 0x1a4   : > { %v832_v23 = vpop.f32.mrf.mxu0  ;;  %v845_v24 = vpop.f32.mrf.mxu1 }
 0x1a5 PF: > { %v3354_v25 = vld [vmem:[%s583_s4] sm:$0xff]  ;;  %v3358_v26 = vld [vmem:[%s593_s11] sm:$0xff]  ;;  %v2985_v34 = vmov 128.0   ;;  %vm1217_vm12 = vcmask 1043456   ;;  %vm1182_vm13 = vcmask 64512   ;;  %vm1204_vm14 = vcmask 7168  }
 0x1a6   : > { %858 = vadd.xlane.f32.xlu0 %v3354_v25  ;;  %895 = vadd.xlane.f32.xlu1 %v3358_v26  ;;  %v868_v27 = vmul.f32 %v3354_v25, %v3354_v25  ;;  %v898_v28 = vmul.f32 %v3358_v26, %v3358_v26  ;;  %v2062_v29 = vld [vmem:[#allocation14 + $0x70] sm:$0xf]  ;;  %v2299_v30 = vld [vmem:[#allocation14 + $0x74] sm:$0xf0]  ;;  %v2298_v31 = vld [vmem:[#allocation14 + $0x74] sm:$0xf]  ;;  %2538 = vrcp.f32 %v2985_v34 }
 0x1a7   : > { %v2063_v32 = vor.u32 %v2299_v30, %v2062_v29  ;;  %v2064_v33 = vld [vmem:[#allocation14 + $0x78] sm:$0xf0]  ;;  %v2054_v36 = vld [vmem:[#allocation14 + $0x60] sm:$0xf]  ;;  %v2297_v37 = vld [vmem:[#allocation14 + $0x64] sm:$0xf0] }
 0x1a8   : > { %v2067_v35 = vor.u32 %v2298_v31, %v2064_v33  ;;  %v2296_v38 = vld [vmem:[#allocation14 + $0x64] sm:$0xf]  ;;  %v2055_v39 = vor.u32 %v2297_v37, %v2054_v36  ;;  %v2056_v40 = vld [vmem:[#allocation14 + $0x68] sm:$0xf0]  ;;  %v2046_v43 = vld [vmem:[#allocation14 + $0x50] sm:$0xf] }
 0x1a9   : > { %1016 = vmatpush.bf16.msra.mxu0 %v2063_v32  ;;  %v2059_v41 = vor.u32 %v2296_v38, %v2056_v40  ;;  %v2295_v44 = vld [vmem:[#allocation14 + $0x54] sm:$0xf0]  ;;  %v2294_v45 = vld [vmem:[#allocation14 + $0x54] sm:$0xf]  ;;  %v2048_v47 = vld [vmem:[#allocation14 + $0x58] sm:$0xf0] }
 0x1aa   : > { %1029 = vmatpush.bf16.msra.mxu1 %v2067_v35  ;;  %v2047_v46 = vor.u32 %v2295_v44, %v2046_v43  ;;  %v2051_v48 = vor.u32 %v2294_v45, %v2048_v47  ;;  %v2038_v50 = vld [vmem:[#allocation14 + $0x40] sm:$0xf]  ;;  %v2293_v51 = vld [vmem:[#allocation14 + $0x44] sm:$0xf0]  ;;  %v2292_v52 = vld [vmem:[#allocation14 + $0x44] sm:$0xf] }
 0x1ab   : > { %v2039_v53 = vor.u32 %v2293_v51, %v2038_v50  ;;  %v2040_v54 = vld [vmem:[#allocation14 + $0x48] sm:$0xf0]  ;;  %v2030_v57 = vld [vmem:[#allocation14 + $0x30] sm:$0xf]  ;;  %v2291_v58 = vld [vmem:[#allocation14 + $0x34] sm:$0xf0] }
 0x1ac   : > { %v2539_v42 = vpop.eup %2538  ;;  %v2043_v55 = vor.u32 %v2292_v52, %v2040_v54  ;;  %v2290_v59 = vld [vmem:[#allocation14 + $0x34] sm:$0xf]  ;;  %v2031_v60 = vor.u32 %v2291_v58, %v2030_v57  ;;  %v2032_v61 = vld [vmem:[#allocation14 + $0x38] sm:$0xf0]  ;;  %v2022_v3 = vld [vmem:[#allocation14 + $0x20] sm:$0xf] }
 0x1ad   : > { %1017 = vmatpush.bf16.msra.mxu0 %v2055_v39  ;;  %v861_v49 = vmul.f32 128.0, %v2539_v42  ;;  %v2035_v62 = vor.u32 %v2290_v59, %v2032_v61  ;;  %v2289_v4 = vld [vmem:[#allocation14 + $0x24] sm:$0xf0]  ;;  %v2288_v5 = vld [vmem:[#allocation14 + $0x24] sm:$0xf]  ;;  %vm865_vm5 = vweird.f32 %v2539_v42  ;;  %s3542_s24 = sld [smem:[#allocation29_spill]] }
 0x1ae   : > { %869 = vadd.xlane.f32.xlu0 %v868_v27  ;;  %899 = vadd.xlane.f32.xlu1 %v898_v28  ;;  %v2023_v6 = vor.u32 %v2289_v4, %v2022_v3  ;;  %v2024_v7 = vld [vmem:[#allocation14 + $0x28] sm:$0xf0]  ;;  %v2014_v8 = vld [vmem:[#allocation14 + $0x10] sm:$0xf]  ;;  %v2287_v9 = vld [vmem:[#allocation14 + $0x14] sm:$0xf0] }
 0x1af   : > { %1030 = vmatpush.bf16.msra.mxu1 %v2059_v41  ;;  %v862_v56 = vsub.f32 1.0, %v861_v49  ;;  %v2027_v10 = vor.u32 %v2288_v5, %v2024_v7  ;;  %v2286_v11 = vld [vmem:[#allocation14 + $0x14] sm:$0xf]  ;;  %v2016_v12 = vld [vmem:[#allocation14 + $0x18] sm:$0xf0]  ;;  %v2015_v14 = vor.u32 %v2287_v9, %v2014_v8 }
 0x1b0   : > { %v2019_v15 = vor.u32 %v2286_v11, %v2016_v12  ;;  %v2006_v16 = vld [vmem:[#allocation14] sm:$0xf]  ;;  %v2285_v17 = vld [vmem:[#allocation14 + $0x4] sm:$0xf0]  ;;  %v2284_v19 = vld [vmem:[#allocation14 + $0x4] sm:$0xf] }
 0x1b1   : > { %1018 = vmatpush.bf16.msra.mxu0 %v2047_v46  ;;  %v863_v63 = vmul.f32 %v2539_v42, %v862_v56  ;;  %v2008_v20 = vld [vmem:[#allocation14 + $0x8] sm:$0xf0]  ;;  %v2007_v21 = vor.u32 %v2285_v17, %v2006_v16  ;;  %v2126_v30 = vld [vmem:[#allocation15 + $0x70] sm:$0xf]  ;;  %v2315_v31 = vld [vmem:[#allocation15 + $0x74] sm:$0xf0] }
 0x1b2   : > { %v2011_v22 = vor.u32 %v2284_v19, %v2008_v20  ;;  %v2314_v32 = vld [vmem:[#allocation15 + $0x74] sm:$0xf]  ;;  %v2127_v33 = vor.u32 %v2315_v31, %v2126_v30  ;;  %v2128_v34 = vld [vmem:[#allocation15 + $0x78] sm:$0xf0]  ;;  %v2118_v35 = vld [vmem:[#allocation15 + $0x60] sm:$0xf] }
 0x1b3   : > { %1031 = vmatpush.bf16.msra.mxu1 %v2051_v48  ;;  %v864_v13 = vadd.f32 %v2539_v42, %v863_v63  ;;  %v2313_v36 = vld [vmem:[#allocation15 + $0x64] sm:$0xf0]  ;;  %v2131_v38 = vor.u32 %v2314_v32, %v2128_v34  ;;  %v2312_v39 = vld [vmem:[#allocation15 + $0x64] sm:$0xf]  ;;  %v2120_v40 = vld [vmem:[#allocation15 + $0x68] sm:$0xf0] }
 0x1b4   : > { %1140 = vmatpush.bf16.msra.mxu2 %v2127_v33  ;;  %v2123_v44 = vor.u32 %v2312_v39, %v2120_v40  ;;  %v2110_v45 = vld [vmem:[#allocation15 + $0x50] sm:$0xf]  ;;  %v2311_v46 = vld [vmem:[#allocation15 + $0x54] sm:$0xf0]  ;;  %v2310_v47 = vld [vmem:[#allocation15 + $0x54] sm:$0xf] }
 0x1b5   : > { %1019 = vmatpush.bf16.msra.mxu0 %v2039_v53  ;;  %v866_v2 = vsel %vm865_vm5, %v2539_v42, %v864_v13  ;;  %v2119_v42 = vor.u32 %v2313_v36, %v2118_v35  ;;  %1153 = vmatpush.bf16.msra.mxu3 %v2131_v38  ;;  %v2112_v48 = vld [vmem:[#allocation15 + $0x58] sm:$0xf0]  ;;  %v2111_v50 = vor.u32 %v2311_v46, %v2110_v45  ;;  %v2102_v53 = vld [vmem:[#allocation15 + $0x40] sm:$0xf]  ;;  %v2309_v54 = vld [vmem:[#allocation15 + $0x44] sm:$0xf0] }
 0x1b6   : > { %v2115_v52 = vor.u32 %v2310_v47, %v2112_v48  ;;  %v2308_v56 = vld [vmem:[#allocation15 + $0x44] sm:$0xf]  ;;  %v2104_v57 = vld [vmem:[#allocation15 + $0x48] sm:$0xf0]  ;;  %v2103_v59 = vor.u32 %v2309_v54, %v2102_v53  ;;  %v2307_v63 = vld [vmem:[#allocation15 + $0x34] sm:$0xf0] }
 0x1b7   : > { %1032 = vmatpush.bf16.msra.mxu1 %v2043_v55  ;;  %v2107_v61 = vor.u32 %v2308_v56, %v2104_v57  ;;  %v2306_v5 = vld [vmem:[#allocation15 + $0x34] sm:$0xf]  ;;  %v2305_v11 = vld [vmem:[#allocation15 + $0x24] sm:$0xf0]  ;;  %v2304_v13 = vld [vmem:[#allocation15 + $0x24] sm:$0xf] }
 0x1b8   : > { %1141 = vmatpush.bf16.msra.mxu2 %v2119_v42  ;;  %v2303_v19 = vld [vmem:[#allocation15 + $0x14] sm:$0xf0]  ;;  %v892_v32 = vperm.slane %v3338_v1, 0  ;;  %v2070_v35 = vld [vmem:[#allocation15] sm:$0xf]  ;;  %p2134_p1 = scmp.ne.s32.totalorder %s3542_s24, 1 }
 0x1b9   : > { %1020 = vmatpush.bf16.msra.mxu0 %v2031_v60  ;;  %1154 = vmatpush.bf16.msra.mxu3 %v2123_v44  ;;  %v2301_v36 = vld [vmem:[#allocation15 + $0x4] sm:$0xf0]  ;;  %s3543_s28 = sld [smem:[#allocation46_spill]] (!%p2134_p1) }
 0x1ba   : > { %s3544_s8 = sld [smem:[#allocation48_spill]] (!%p2134_p1) }
 0x1bb   : > { %1033 = vmatpush.bf16.msra.mxu1 %v2035_v62  ;;  %v2094_v62 = vld [vmem:[#allocation15 + $0x30] sm:$0xf]  ;;  %s3545_s22 = sld [smem:[#allocation50_spill]] (!%p2134_p1) }
 0x1bc   : > { %1142 = vmatpush.bf16.msra.mxu2 %v2111_v50  ;;  %v2095_v8 = vor.u32 %v2307_v63, %v2094_v62 }
 0x1bd   : > { %1021 = vmatpush.bf16.msra.mxu0 %v2023_v6  ;;  %1155 = vmatpush.bf16.msra.mxu3 %v2115_v52  ;;  %v2096_v6 = vld [vmem:[#allocation15 + $0x38] sm:$0xf0] }
 0x1be   : > { %v2099_v9 = vor.u32 %v2306_v5, %v2096_v6 }
 0x1bf   : > { %1034 = vmatpush.bf16.msra.mxu1 %v2027_v10  ;;  %v2086_v10 = vld [vmem:[#allocation15 + $0x20] sm:$0xf] }
 0x1c0   : > { %1143 = vmatpush.bf16.msra.mxu2 %v2103_v59  ;;  %v2087_v16 = vor.u32 %v2305_v11, %v2086_v10  ;;  %v1255_v10 = vld [vmem:[#allocation3 + $0x8] sm:$0xff] }
 0x1c1   : > { %1022 = vmatpush.bf16.msra.mxu0 %v2015_v14  ;;  %1156 = vmatpush.bf16.msra.mxu3 %v2107_v61  ;;  %v2088_v14 = vld [vmem:[#allocation15 + $0x28] sm:$0xf0] }
 0x1c2   : > { %v2091_v17 = vor.u32 %v2304_v13, %v2088_v14  ;;  %v1181_v14 = vld [vmem:[#allocation3] sm:$0xff] }
 0x1c3   : > { %1035 = vmatpush.bf16.msra.mxu1 %v2019_v15 }
 0x1c4   : > { %1144 = vmatpush.bf16.msra.mxu2 %v2095_v8 }
 0x1c5   : > { %1023 = vmatpush.bf16.msra.mxu0 %v2007_v21  ;;  %1157 = vmatpush.bf16.msra.mxu3 %v2099_v9  ;;  %v2302_v21 = vld [vmem:[#allocation15 + $0x14] sm:$0xf]  ;;  %v2986_v9 = vmov 0  }
 0x1c6   : > { %2535 = vset.pattern.permute.xlu0 %v2986_v9  ;;  %2536 = vset.pattern.permute.xlu1 %v2986_v9 }
 0x1c7   : > { %1036 = vmatpush.bf16.msra.mxu1 %v2011_v22  ;;  %v2080_v22 = vld [vmem:[#allocation15 + $0x18] sm:$0xf0]  ;;  %2537 = vset.pattern.permute.xlu2 %v2986_v9 }
 0x1c8   : > { %1145 = vmatpush.bf16.msra.mxu2 %v2087_v16  ;;  %v2083_v34 = vor.u32 %v2302_v21, %v2080_v22 }
 0x1c9   : > { %1158 = vmatpush.bf16.msra.mxu3 %v2091_v17 }
 0x1cd   : > { %1159 = vmatpush.bf16.msra.mxu3 %v2083_v34 }
 0x219   : > { %v859_v18 = vpop.xlane.xlu0 %858  ;;  %v896_v29 = vpop.xlane.xlu1 %895 }
 0x21a   : > { %v3366_v23 = vmul.f32 %v866_v2, %v859_v18  ;;  %v3370_v41 = vmul.f32 %v896_v29, %v866_v2  ;;  %v2078_v18 = vld [vmem:[#allocation15 + $0x10] sm:$0xf] }
 0x21b   : > { %v2079_v30 = vor.u32 %v2303_v19, %v2078_v18 }
 0x21c   : > { %v872_v27 = vmul.f32 %v3366_v23, %v3366_v23  ;;  %v902_v49 = vmul.f32 %v3370_v41, %v3370_v41  ;;  %v904_v42 = vsub.f32 %v3358_v26, %v3370_v41  ;;  %v1167_v41 = vld [vmem:[#allocation2] sm:$0xf] }
 0x21d   : > { %1146 = vmatpush.bf16.msra.mxu2 %v2079_v30 }
 0x221   : > { %v870_v24 = vpop.xlane.xlu0 %869  ;;  %v900_v51 = vpop.xlane.xlu1 %899 }
 0x222   : > { %v871_v28 = vmul.f32 %v870_v24, %v866_v2  ;;  %v901_v55 = vmul.f32 %v900_v51, %v866_v2  ;;  %v874_v24 = vsub.f32 %v3354_v25, %v3366_v23  ;;  %v2300_v25 = vld [vmem:[#allocation15 + $0x4] sm:$0xf]  ;;  %v2072_v23 = vld [vmem:[#allocation15 + $0x8] sm:$0xf0] }
 0x223   : > { %v2075_v1 = vor.u32 %v2300_v25, %v2072_v23 }
 0x224   : > { %v873_v37 = vsub.f32 %v871_v28, %v872_v27  ;;  %v903_v58 = vsub.f32 %v901_v55, %v902_v49  ;;  %v888_v27 = vperm.slane %v3333_v0, 0  ;;  %v2071_v0 = vor.u32 %v2301_v36, %v2070_v35  ;;  %v1237_v55 = vld [vmem:[#allocation2 + $0x4] sm:$0xf] }
 0x225   : > { %1160 = vmatpush.bf16.msra.mxu3 %v2075_v1  ;;  %v1272_v36 = vld [vmem:[#allocation4 + $0x8] sm:$0xff]  ;;  %v1279_v1 = vld [vmem:[#allocation5 + $0x8] sm:$0xff] }
 0x226   : > { %v875_v43 = vadd.f32 1e-05, %v873_v37  ;;  %v905_v4 = vadd.f32 1e-05, %v903_v58  ;;  %1147 = vmatpush.bf16.msra.mxu2 %v2071_v0  ;;  %v1198_v0 = vld [vmem:[#allocation4] sm:$0xff] }
 0x228   : > { %2540 = vrsqrt.f32 %v875_v43  ;;  %vm882_vm7 = vweird.f32 %v875_v43  ;;  %vm912_vm9 = vweird.f32 %v905_v4 }
 0x229   : > { %2542 = vrsqrt.f32 %v905_v4 }
 0x22e   : > { %v2541_v60 = vpop.eup %2540 }
 0x22f   : > { %v877_v3 = vmul.f32 %v2541_v60, %v875_v43  ;;  %vm883_vm6 = vweird.f32 %v2541_v60  ;;  %v2543_v20 = vpop.eup %2542 }
 0x230   : > { %vm884_vm8 = vmor %vm882_vm7, %vm883_vm6  ;;  %v907_v28 = vmul.f32 %v2543_v20, %v905_v4  ;;  %vm913_vm10 = vweird.f32 %v2543_v20 }
 0x231   : > { %v878_v7 = vmul.f32 %v2541_v60, %v877_v3  ;;  %vm914_vm11 = vmor %vm912_vm9, %vm913_vm10 }
 0x232   : > { %v908_v33 = vmul.f32 %v2543_v20, %v907_v28 }
 0x233   : > { %v879_v12 = vmul.f32 0.5, %v878_v7 }
 0x234   : > { %v909_v38 = vmul.f32 0.5, %v908_v33 }
 0x235   : > { %v880_v15 = vsub.f32 1.5, %v879_v12 }
 0x236   : > { %v910_v40 = vsub.f32 1.5, %v909_v38 }
 0x237   : > { %v881_v2 = vmul.f32 %v2541_v60, %v880_v15 }
 0x238   : > { %v911_v44 = vmul.f32 %v2543_v20, %v910_v40 }
 0x239   : > { %v885_v29 = vsel %vm884_vm8, %v2541_v60, %v881_v2 }
 0x23a   : > { %v886_v31 = vmul.f32 %v885_v29, %v874_v24  ;;  %v915_v45 = vsel %vm914_vm11, %v2543_v20, %v911_v44 }
 0x23b   : > { %v916_v46 = vmul.f32 %v915_v45, %v904_v42 }
 0x23c   : > { %v890_v37 = vmul.f32 %v888_v27, %v886_v31 }
 0x23d   : > { %v917_v47 = vmul.f32 %v916_v46, %v888_v27 }
 0x23e   : > { %v894_v39 = vadd.f32 %v892_v32, %v890_v37 }
 0x23f   : > { %v918_v48 = vadd.f32 %v917_v47, %v892_v32 }
 0x240   : > { %v919_v43 = vpack.c.bf16 %v894_v39, %v894_v39 }
 0x241   : > { %v1043_v49 = vpack.c.bf16 %v918_v48, %v918_v48 }
 0x242   : > { %1024 = vmatmul.bf16.vlgmr.msra.gmra.mxu0 %v919_v43  ;;  %1037 = vmatmul.bf16.vlgmr.msra.gmra.mxu1 %v919_v43  ;;  %v1206_v43 = vld [vmem:[#allocation5] sm:$0xff] }
 0x243   : > { %1148 = vmatmul.bf16.vlgmr.msra.gmra.mxu2 %v1043_v49  ;;  %1161 = vmatmul.bf16.vlgmr.msra.gmra.mxu3 %v1043_v49 }
 0x2bf   : > { %v1025_v50 = vpop.f32.mrf.mxu0  ;;  %v1038_v51 = vpop.f32.mrf.mxu1 }
 0x2c0   : > { %v1042_v52 = vpack.c.bf16 %v1038_v51, %v1025_v50 }
 0x2c2   : > { %1175 = vmatpush.bf16.xpose.msrb.mxu0 %v1042_v52  ;;  %v1239_v26 = vrot.slane %v1042_v52, 4 }
 0x2c4   : > { %1248 = vmatpush.bf16.xpose.msrb.mxu2 %v1239_v26 }
 0x2c6   : > { %v1149_v56 = vpop.f32.mrf.mxu2  ;;  %v1162_v57 = vpop.f32.mrf.mxu3 }
 0x2c7   : > { %v1027_v53 = vpop.f32.mrf.mxu0  ;;  %v1040_v54 = vpop.f32.mrf.mxu1  ;;  %v1166_v58 = vpack.c.bf16 %v1162_v57, %v1149_v56 }
 0x2c9   : > { %1176 = vmatmul.bf16.vlgmr.msrb.gmra.mxu0 %v1167_v41  ;;  %v1219_v59 = vsel %vm1217_vm12, %v1166_v58, 0  ;;  %v1288_v60 = vrot.slane %v1166_v58, 4 }
 0x2ca   : > { %1228 = vmatpush.bf16.msrb.mxu1 %v1219_v59 }
 0x2cb   : > { %1249 = vmatmul.bf16.vlgmr.msrb.gmra.mxu2 %v1237_v55  ;;  %v1293_v61 = vsel %vm1217_vm12, %v1288_v60, 0 }
 0x2cc   : > { %1302 = vmatpush.bf16.msrb.mxu3 %v1293_v61 }
 0x2ce   : > { %v1151_v62 = vpop.f32.mrf.mxu2  ;;  %v1164_v63 = vpop.f32.mrf.mxu3 }
 0x346   : > { %v1177_v3 = vpop.f32.mrf.mxu0 }
 0x347   : > { %v1183_v7 = vsel %vm1182_vm13, %v1177_v3, -inf }
 0x34e   : > { %v1250_v4 = vpop.f32.mrf.mxu2  ;;  %v1179_v5 = vpop.f32.mrf.mxu0 }
 0x34f   : > { %v1256_v6 = vsel %vm1182_vm13, %v1250_v4, -inf }
 0x350   : > { %1257 = vmax.xlane.f32.xlu2 %v1256_v6 }
 0x356   : > { %v1252_v8 = vpop.f32.mrf.mxu2 }
 0x358   : > { %1184 = vmax.xlane.f32.xlu2 %v1183_v7 }
 0x3c3   : > { %v1258_v11 = vpop.xlane.xlu2 %1257 }
 0x3c4   : > { %v1259_v12 = vmax.f32 %v1255_v10, %v1258_v11 }
 0x3c6   : > { %v1260_v13 = vsub.f32 %v1255_v10, %v1259_v12  ;;  %1310 = vst.msk [vmem:[#allocation3 + $0x8] sm:$0xff] %vm1204_vm14, %v1259_v12  ;;  %1265 = vperm.xlu0 %2535, %v1259_v12  }
 0x3c8   : > { %v1261_v34 = vmul.f32 1.442695, %v1260_v13 }
 0x3cb   : > { %v1185_v15 = vpop.xlane.xlu2 %1184 }
 0x3cc   : > { %v1186_v16 = vmax.f32 %v1181_v14, %v1185_v15 }
 0x3ce   : > { %v1187_v17 = vsub.f32 %v1181_v14, %v1186_v16  ;;  %1236 = vst.msk [vmem:[#allocation3] sm:$0xff] %vm1204_vm14, %v1186_v16  ;;  %1192 = vperm.xlu1 %2536, %v1186_v16  }
 0x3d0   : > { %v1188_v18 = vmul.f32 1.442695, %v1187_v17 }
 0x3d2   : > { %2544 = vpow2.f32 %v1188_v18 }
 0x3d8   : > { %v2545_v19 = vpop.eup %2544 }
 0x3d9   : > { %1209 = vperm.xlu2 %2537, %v2545_v19   ;;  %v1199_v39 = vmul.f32 %v2545_v19, %v1198_v0 }
 0x433   : > { %v1210_v38 = vpop.permute.xlu2 %1209 }
 0x434   : > { %v1212_v47 = vmul.f32 %v1210_v38, %v1206_v43 }
 0x438   : > { %v1266_v20 = vpop.permute.xlu0 %1265 }
 0x439   : > { %v1268_v2 = vsub.f32 %v1250_v4, %v1266_v20 }
 0x43b   : > { %v1269_v21 = vmul.f32 1.442695, %v1268_v2 }
 0x43d   : > { %2546 = vpow2.f32 %v1269_v21 }
 0x440   : > { %v1193_v22 = vpop.permute.xlu1 %1192 }
 0x441   : > { %v1195_v24 = vsub.f32 %v1177_v3, %v1193_v22 }
 0x443   : > { %v2547_v27 = vpop.eup %2546  ;;  %v1196_v28 = vmul.f32 1.442695, %v1195_v24 }
 0x444   : > { %v1274_v29 = vsel %vm1182_vm13, %v2547_v27, 0.0  ;;  %v1286_v30 = vpack.c.bf16 %v2547_v27, %v2547_v27 }
 0x445   : > { %2548 = vpow2.f32 %v1196_v28  ;;  %1275 = vadd.xlane.f32.xlu1 %v1274_v29 }
 0x446   : > { %2133 = vmatmul.msk.bf16.vlgmr.msrb.gmra.mxu3 %vm1182_vm13, %v1286_v30  ;;  %2550 = vpow2.f32 %v1261_v34 }
 0x44b   : > { %v2549_v31 = vpop.eup %2548 }
 0x44c   : > { %v1200_v32 = vsel %vm1182_vm13, %v2549_v31, 0.0  ;;  %v1213_v33 = vpack.c.bf16 %v2549_v31, %v2549_v31  ;;  %v2551_v35 = vpop.eup %2550 }
 0x44d   : > { %1201 = vadd.xlane.f32.xlu2 %v1200_v32  ;;  %v1273_v37 = vmul.f32 %v2551_v35, %v1272_v36 }
 0x44e   : > { %2132 = vmatmul.msk.bf16.vlgmr.msrb.gmra.mxu1 %vm1182_vm13, %v1213_v33 }
 0x465   : > { %1282 = vperm.xlu2 %2537, %v2551_v35  }
 0x4b8   : > { %v1276_v25 = vpop.xlane.xlu1 %1275 }
 0x4b9   : > { %v1277_v23 = vadd.f32 %v1276_v25, %v1273_v37 }
 0x4bb   : > { %1278 = vst.msk [vmem:[#allocation4 + $0x8] sm:$0xff] %vm1204_vm14, %v1277_v23 }
 0x4c0   : > { %v1202_v40 = vpop.xlane.xlu2 %1201 }
 0x4c1   : > { %v1203_v42 = vadd.f32 %v1202_v40, %v1199_v39 }
 0x4c3   : > { %1205 = vst.msk [vmem:[#allocation4] sm:$0xff] %vm1204_vm14, %v1203_v42 }
 0x4c8   : > { %v1283_v44 = vpop.permute.xlu2 %1282 }
 0x4c9   : > { %v1285_v45 = vmul.f32 %v1283_v44, %v1279_v1  ;;  %v1304_v46 = vpop.f32.mrf.mxu3 }
 0x4cb   : > { %v1308_v48 = vadd.f32 %v1304_v46, %v1285_v45  ;;  %v1230_v49 = vpop.f32.mrf.mxu1 }
 0x4cc   : > { %v1234_v50 = vadd.f32 %v1230_v49, %v1212_v47 }
 0x4cd   : > { %1309 = vst [vmem:[#allocation5 + $0x8] sm:$0xff] %v1308_v48 }
 0x4ce   : > { %1235 = vst [vmem:[#allocation5] sm:$0xff] %v1234_v50 }
 0x4cf   : > { %1314 = sbr.rel (%p2134_p1) target bundleno = 1830 (0x726), region = 120 }
 0x4d1   : > { %v1306_v51 = vpop.f32.mrf.mxu3 }
 0x4d3   : > { %v1232_v52 = vpop.f32.mrf.mxu1 }
 0x4d4   : > { %v1315_v26 = vld [vmem:[#allocation4] sm:$0xff]  ;;  %v2323_v41 = vld [vmem:[#allocation17 + $0x38] sm:$0xff]  ;;  %v2987_v53 = vmov 0   ;;  %v2321_v58 = vld [vmem:[#allocation17 + $0x28] sm:$0xff] }
 0x4d5   : > { %2552 = vset.pattern.permute.xlu0 %v2987_v53  ;;  %2556 = vrcp.f32 %v1315_v26  ;;  %v2331_v54 = vld [vmem:[#allocation17 + $0x78] sm:$0xff]  ;;  %1472 = vmatpush.bf16.msra.mxu0 %v2323_v41  ;;  %v2322_v55 = vld [vmem:[#allocation17 + $0x30] sm:$0xff]  ;;  %v2329_v60 = vld [vmem:[#allocation17 + $0x68] sm:$0xff] }
 0x4d6   : > { %1485 = vmatpush.bf16.msra.mxu1 %v2331_v54  ;;  %v2330_v56 = vld [vmem:[#allocation17 + $0x70] sm:$0xff]  ;;  %v1325_v57 = vld [vmem:[#allocation4 + $0x8] sm:$0xff]  ;;  %v2320_v61 = vld [vmem:[#allocation17 + $0x20] sm:$0xff] }
 0x4d7   : > { %2558 = vrcp.f32 %v1325_v57  ;;  %v2319_v63 = vld [vmem:[#allocation17 + $0x18] sm:$0xff]  ;;  %v2318_v3 = vld [vmem:[#allocation17 + $0x10] sm:$0xff]  ;;  %v2328_v4 = vld [vmem:[#allocation17 + $0x60] sm:$0xff] }
 0x4d8   : > { %v2317_v5 = vld [vmem:[#allocation17 + $0x8] sm:$0xff]  ;;  %v2327_v6 = vld [vmem:[#allocation17 + $0x58] sm:$0xff]  ;;  %v2316_v7 = vld [vmem:[#allocation17] sm:$0xff] }
 0x4d9   : > { %1473 = vmatpush.bf16.msra.mxu0 %v2322_v55  ;;  %v2326_v8 = vld [vmem:[#allocation17 + $0x50] sm:$0xff]  ;;  %v2325_v9 = vld [vmem:[#allocation17 + $0x48] sm:$0xff]  ;;  %v2324_v10 = vld [vmem:[#allocation17 + $0x40] sm:$0xff] }
 0x4da   : > { %1486 = vmatpush.bf16.msra.mxu1 %v2330_v56  ;;  %v2339_v11 = vld [vmem:[#allocation18 + $0x38] sm:$0xff]  ;;  %v2338_v12 = vld [vmem:[#allocation18 + $0x30] sm:$0xff]  ;;  %v2337_v13 = vld [vmem:[#allocation18 + $0x28] sm:$0xff] }
 0x4db   : > { %v2557_v59 = vpop.eup %2556  ;;  %1568 = vmatpush.bf16.msra.mxu2 %v2339_v11  ;;  %v2336_v14 = vld [vmem:[#allocation18 + $0x20] sm:$0xff]  ;;  %v1327_v19 = vld [vmem:[#allocation5 + $0x8] sm:$0xff]  ;;  %v2335_v22 = vld [vmem:[#allocation18 + $0x18] sm:$0xff] }
 0x4dc   : > { %1320 = vperm.xlu0 %2552, %v2557_v59   ;;  %v1317_v15 = vld [vmem:[#allocation5] sm:$0xff]  ;;  %v2334_v24 = vld [vmem:[#allocation18 + $0x10] sm:$0xff]  ;;  %v2333_v27 = vld [vmem:[#allocation18 + $0x8] sm:$0xff] }
 0x4dd   : > { %1474 = vmatpush.bf16.msra.mxu0 %v2321_v58  ;;  %v2559_v62 = vpop.eup %2558  ;;  %v2332_v28 = vld [vmem:[#allocation18] sm:$0xff]  ;;  %v2553_v30 = vld [vmem:[%s3543_s28] ss:$0 sm:$0xff]  ;;  %v2346_v23 = vld [vmem:[#allocation20 + $0x30] sm:$0xff] }
 0x4de   : > { %1487 = vmatpush.bf16.msra.mxu1 %v2329_v60  ;;  %v1339_v33 = vld [vmem:[%s3302_s19] sm:$0xff]  ;;  %v2345_v39 = vld [vmem:[#allocation20 + $0x28] sm:$0xff]  ;;  %v2344_v1 = vld [vmem:[#allocation20 + $0x20] sm:$0xff] }
 0x4df   : > { %1569 = vmatpush.bf16.msra.mxu2 %v2338_v12  ;;  %v2347_v25 = vld [vmem:[#allocation20 + $0x38] sm:$0xff]  ;;  %v2342_v49 = vld [vmem:[#allocation20 + $0x10] sm:$0xff]  ;;  %v2341_v41 = vld [vmem:[#allocation20 + $0x8] sm:$0xff] }
 0x4e0   : > { %1694 = vmatpush.bf16.msra.mxu3 %v2347_v25  ;;  %v2554_v0 = vld [vmem:[%s3544_s8] ss:$0 sm:$0xff]  ;;  %v2340_v56 = vld [vmem:[#allocation20] sm:$0xff] }
 0x4e1   : > { %1475 = vmatpush.bf16.msra.mxu0 %v2320_v61  ;;  %v2343_v45 = vld [vmem:[#allocation20 + $0x18] sm:$0xff] }
 0x4e2   : > { %1488 = vmatpush.bf16.msra.mxu1 %v2328_v4 }
 0x4e3   : > { %1570 = vmatpush.bf16.msra.mxu2 %v2337_v13 }
 0x4e4   : > { %1330 = vperm.xlu0 %2552, %v2559_v62   ;;  %1695 = vmatpush.bf16.msra.mxu3 %v2346_v23 }
 0x4e5   : > { %1476 = vmatpush.bf16.msra.mxu0 %v2319_v63 }
 0x4e6   : > { %1489 = vmatpush.bf16.msra.mxu1 %v2327_v6 }
 0x4e7   : > { %1571 = vmatpush.bf16.msra.mxu2 %v2336_v14 }
 0x4e8   : > { %1696 = vmatpush.bf16.msra.mxu3 %v2345_v39 }
 0x4e9   : > { %1477 = vmatpush.bf16.msra.mxu0 %v2318_v3 }
 0x4ea   : > { %1490 = vmatpush.bf16.msra.mxu1 %v2326_v8 }
 0x4eb   : > { %1572 = vmatpush.bf16.msra.mxu2 %v2335_v22 }
 0x4ec   : > { %1697 = vmatpush.bf16.msra.mxu3 %v2344_v1 }
 0x4ed   : > { %1478 = vmatpush.bf16.msra.mxu0 %v2317_v5 }
 0x4ee   : > { %1491 = vmatpush.bf16.msra.mxu1 %v2325_v9 }
 0x4ef   : > { %1573 = vmatpush.bf16.msra.mxu2 %v2334_v24 }
 0x4f0   : > { %1698 = vmatpush.bf16.msra.mxu3 %v2343_v45 }
 0x4f1   : > { %1479 = vmatpush.bf16.msra.mxu0 %v2316_v7 }
 0x4f2   : > { %1492 = vmatpush.bf16.msra.mxu1 %v2324_v10 }
 0x4f3   : > { %1574 = vmatpush.bf16.msra.mxu2 %v2333_v27  ;;  %v2555_v27 = vld [vmem:[%s3545_s22] ss:$0 sm:$0xff] }
 0x4f4   : > { %1699 = vmatpush.bf16.msra.mxu3 %v2342_v49 }
 0x4f7   : > { %1575 = vmatpush.bf16.msra.mxu2 %v2332_v28 }
 0x4f8   : > { %1700 = vmatpush.bf16.msra.mxu3 %v2341_v41 }
 0x4fc   : > { %1701 = vmatpush.bf16.msra.mxu3 %v2340_v56 }
 0x54e   : > { %v1321_v16 = vpop.permute.xlu0 %1320 }
 0x54f   : > { %v1323_v17 = vmul.f32 %v1321_v16, %v1317_v15 }
 0x551   : > { %1324 = vst [vmem:[#allocation5] sm:$0xff] %v1323_v17  ;;  %v1337_v18 = vpack.c.bf16 %v1323_v17, %v1323_v17 }
 0x553   : > { %1480 = vmatmul.bf16.vlgmr.msra.gmra.mxu0 %v1337_v18 }
 0x556   : > { %v1331_v20 = vpop.permute.xlu0 %1330 }
 0x557   : > { %v1333_v2 = vmul.f32 %v1331_v20, %v1327_v19 }
 0x559   : > { %1334 = vst [vmem:[#allocation5 + $0x8] sm:$0xff] %v1333_v2  ;;  %v1338_v21 = vpack.c.bf16 %v1333_v2, %v1333_v2 }
 0x55b   : > { %1493 = vmatmul.bf16.vlgmr.msra.gmra.mxu1 %v1338_v21 }
 0x5d0   : > { %v1481_v29 = vpop.f32.mrf.mxu0 }
 0x5d1   : > { %v1482_v31 = vadd.f32 %v2553_v30, %v1481_v29 }
 0x5d8   : > { %v1483_v32 = vpop.f32.mrf.mxu0  ;;  %v1494_v34 = vpop.f32.mrf.mxu1 }
 0x5d9   : > { %v1495_v35 = vadd.f32 %v1494_v34, %v1482_v31 }
 0x5db   : > { %v3395_v36 = vadd.f32 %v1495_v35, %v1339_v33 }
 0x5dd   : > { %v1499_v37 = vpack.c.bf16 %v3395_v36, %v3395_v36 }
 0x5df   : > { %1576 = vmatmul.bf16.vlgmr.msra.gmra.mxu2 %v1499_v37 }
 0x5e0   : > { %v1496_v38 = vpop.f32.mrf.mxu1 }
 0x662   : > { %v1577_v40 = vpop.f32.mrf.mxu2 }
 0x663   : > { %v1578_v42 = vadd.f32 %v2554_v0, %v1577_v40 }
 0x665   : > { %v1582_v43 = vmul.f32 0.70710677, %v1578_v42  ;;  %v1581_v2 = vmul.f32 0.5, %v1578_v42 }
 0x667   : > { %v1583_v44 = vmul.f32 %v1582_v43, %v1582_v43 }
 0x669   : > { %v1584_v46 = vmin.f32 %v1583_v44, 16.0 }
 0x66a   : > { %v1579_v47 = vpop.f32.mrf.mxu2 }
 0x66b   : > { %v1585_v48 = vmul.f32 2.1237322e-06, %v1584_v46  ;;  %v1596_v50 = vmul.f32 3.8918573e-05, %v1584_v46 }
 0x66d   : > { %v1586_v51 = vadd.f32 0.00028619796, %v1585_v48  ;;  %v1597_v52 = vadd.f32 0.001143296, %v1596_v50 }
 0x66f   : > { %v1587_v26 = vmul.f32 %v1586_v51, %v1584_v46  ;;  %v1598_v53 = vmul.f32 %v1597_v52, %v1584_v46 }
 0x671   : > { %v1599_v54 = vadd.f32 0.014752088, %v1598_v53  ;;  %v1588_v55 = vadd.f32 0.0036580483, %v1587_v26 }
 0x673   : > { %v1600_v57 = vmul.f32 %v1599_v54, %v1584_v46  ;;  %v1589_v59 = vmul.f32 %v1588_v55, %v1584_v46 }
 0x675   : > { %v1601_v58 = vadd.f32 0.112945676, %v1600_v57  ;;  %v1590_v62 = vadd.f32 0.05243302, %v1589_v59 }
 0x677   : > { %v1602_v60 = vmul.f32 %v1601_v58, %v1584_v46  ;;  %v1591_v4 = vmul.f32 %v1590_v62, %v1584_v46 }
 0x679   : > { %v1603_v61 = vadd.f32 0.4994258, %v1602_v60  ;;  %v1592_v5 = vadd.f32 0.18741608, %v1591_v4 }
 0x67b   : > { %v1604_v63 = vmul.f32 %v1603_v61, %v1584_v46  ;;  %v1593_v7 = vmul.f32 %v1592_v5, %v1584_v46 }
 0x67d   : > { %v1605_v3 = vadd.f32 1.0, %v1604_v63  ;;  %v1594_v11 = vadd.f32 1.1283791, %v1593_v7 }
 0x67f   : > { %2560 = vrcp.f32 %v1605_v3  ;;  %v1617_v10 = vand.u32 2147483648, %v1605_v3  ;;  %v1615_v13 = vand.u32 2147483647, %v1605_v3  ;;  %vm1611_vm0 = vweird.f32 %v1605_v3 }
 0x680   : > { %v1595_v16 = vmul.f32 %v1594_v11, %v1582_v43 }
 0x681   : > { %v1618_v15 = vor.u32 1.1754944e-38, %v1617_v10  ;;  %vm1616_vm2 = vcmp.eq.f32.partialorder %v1615_v13, 8.507059e+37 }
 0x685   : > { %v2561_v6 = vpop.eup %2560 }
 0x686   : > { %v1607_v8 = vmul.f32 %v2561_v6, %v1605_v3  ;;  %vm1612_vm15 = vweird.f32 %v2561_v6 }
 0x687   : > { %vm1613_vm1 = vmor %vm1611_vm0, %vm1612_vm15 }
 0x688   : > { %v1608_v9 = vsub.f32 1.0, %v1607_v8 }
 0x68a   : > { %v1609_v12 = vmul.f32 %v2561_v6, %v1608_v9 }
 0x68c   : > { %v1610_v14 = vadd.f32 %v2561_v6, %v1609_v12 }
 0x68e   : > { %v1614_v17 = vsel %vm1613_vm1, %v2561_v6, %v1610_v14 }
 0x68f   : > { %v1619_v18 = vsel %vm1616_vm2, %v1618_v15, %v1614_v17 }
 0x690   : > { %v1620_v19 = vmul.f32 %v1619_v18, %v1595_v16 }
 0x692   : > { %v2231_v20 = vclamps-f32 %v1620_v19, 1.0 }
 0x694   : > { %v1623_v21 = vadd.f32 1.0, %v2231_v20 }
 0x696   : > { %v1624_v22 = vmul.f32 %v1623_v21, %v1581_v2 }
 0x698   : > { %v1625_v24 = vpack.c.bf16 %v1624_v22, %v1624_v22 }
 0x69a   : > { %1702 = vmatmul.bf16.vlgmr.msra.gmra.mxu3 %v1625_v24 }
 0x71d   : > { %v1703_v28 = vpop.f32.mrf.mxu3 }
 0x71e   : > { %v1704_v29 = vadd.f32 %v2555_v27, %v1703_v28 }
 0x720   : > { %v1707_v30 = vadd.f32 %v1704_v29, %v3395_v36 }
 0x722   : > { %1708 = vst [vmem:[%s3340_s20] sm:$0xff] %v1707_v30 }
 0x725   : > { %v1705_v31 = vpop.f32.mrf.mxu3 }
 0x726 PF: > { %s3546_s26 = sld [smem:[#allocation30_spill]]  ;;  %s1722_s29 = sshll.u32 %s3340_s20, 4  ;;  %s1723_s29 = int_to_ptr.vmem [resolvable:$true] %s1722_s29 }
 0x727   : > { %s3547_s13 = sld [smem:[#allocation51_spill]]  ;;  %s1710_s25 = scalar_lea.sflag [#allocation8], %s3298_s5 }
 0x72c   : > { %s2265_s4 = sshll.u32 %s3546_s26, 3 }
 0x72d   : > { %s1720_s7 = scalar_lea.hbm %s3547_s13, %s2265_s4  ;;  %s2852_s28 = scalar_lea.hbm %s3547_s13, 16 }
 0x72e   : > { %s1724_s3 = sshll.u32 %s1720_s7, 4  ;;  %s1725_s3 = int_to_ptr.hbm [resolvable:$true] %s1724_s3 }
 0x72f   : > { %s2846_s9 = sshra.s32 %s1725_s3, 4  ;;  %s2847_s9 = int_to_ptr.hbm [resolvable:$true] %s2846_s9 }
 0x730   : > { %s2848_s24 = scalar_lea.hbm %s2847_s9, 8  ;;  %p2853_p6 = scmp.lt.s32.totalorder %s2847_s9, %s3547_s13 }
 0x731   : > { %p2849_p12 = scmp.ne.s32.totalorder %s2847_s9, %s2848_s24  ;;  %p2854_p8 = scmp.lt.s32.totalorder %s2852_s28, %s2848_s24 }
 0x733   : > { %p2850_p13 = pnand %p2849_p12, %p3274_p0  ;;  %p2855_p9 = por %p2854_p8, %p2853_p6 }
 0x735   : > { %p2851_p4 = pneg %p2850_p13 }
 0x737   : > { %p2856_p10 = pnand %p2855_p9, %p2851_p4 }
 0x739   : > { %2859 = shalt.err (!%p2856_p10)
}
 0x73a   : > { %2378 = dma.vmem_to_hbm [thread:$0]  (%p3274_p0), %s1723_s29, 128, %s1725_s3, %s1710_s25  }
 0x73b PF: > { %p2426_p11 = scmp.ge.s32.totalorder %s2970_s23, 2  ;;  %s1736_s5 = sand.u32 1, %s2942_s16  }
 0x73c   : > { %s1737_s20 = scalar_lea.sflag [#allocation8], %s1736_s5 }
 0x73d   : > { %p2410_p5 = pnand %p2426_p11, %p3278_p7 }
 0x73f   : > { %p2411_p2 = pneg %p2410_p5 }
 0x741   : > { %2925 = dma.done.wait (%p2411_p2), %s1737_s20, 128  }
 0x742   : > { %2927 = vsyncadd (%p2411_p2), %s1737_s20, 4294967168  ;;  %s36_s23 = sadd.s32 1, %s2970_s23   ;;  %s3548_s29 = sld [smem:[#allocation28_spill]] }
 0x743   : > { %p33_p3 = scmp.ge.s32.totalorder %s36_s23, 6   ;;  %s3549_s14 = smov %s3256_s30 }
 0x744   : > { %s3550_s19 = sld [smem:[#allocation31_spill]]  ;;  %s3554_s30 = smov %s2938_s15 }
 0x745   : > { %s3551_s20 = sld [smem:[#allocation32_spill]]  ;;  %s3555_s15 = smov %s3200_s10 }
 0x746   : > { %s3552_s21 = sld [smem:[#allocation34_spill]]  ;;  %s3556_s16 = smov %s2946_s17 }
 0x747   : > { %s3553_s22 = sld [smem:[#allocation35_spill]]  ;;  %s3557_s17 = smov %s2950_s18 }
 0x748   : > { %s3558_s18 = smov %s3549_s14  ;;  %35 = sbr.rel (!%p33_p3) target bundleno = 30 (0x1e), region = 179 }
 0x74d   :  { %1743 = vsyncpa [#allocation7], 1 }
 0x74e   :  { %1745 = vsyncpa [#allocation7 + $0x1], 1 }
 0x74f   :  { %1746 = vsyncpa [#allocation10], 1 }
 0x750   :  { %1748 = vsyncpa [#allocation10 + $0x1], 1 }
 0x751   :  { %1749 = vsyncpa [#allocation13], 1 }
 0x752   :  { %1750 = vsyncpa [#allocation16], 1 }
 0x753   :  { %1751 = vsyncpa [#allocation19], 1 }
 0x754   :  { %1752 = vsyncpa [#allocation8], 1 }
 0x755   :  { %1754 = vsyncpa [#allocation8 + $0x1], 1 }

</bundles_post_ra>
